<compile_context>
chip_gen: v7x
topology: tpu7x:2x2x1
jax: 0.10.0
libtpu: 0.0.40
codegen_flags: <defaults>
</compile_context>

<pallas_src>
import jax
import jax.numpy as jnp
from jax.experimental import pallas as pl
from jax.experimental.pallas import tpu as pltpu

EMBED_SIZE = 768
NUM_CLASSES = 3
LN_EPS = 1e-5
ROW_ALIGN = 16          # bf16-friendly sublane multiple for row tiles
LANE = 128              # lane-dense minimum output width


def _round_up(n, m):
    return pl.cdiv(n, m) * m


# ----------------------------- Pallas kernel ------------------------------
def _ln_linear_kernel(x_ref, g_ref, b_ref, w_ref, wb_ref, o_ref):
    """Fused LayerNorm (f32 stats) + Linear (bf16 operands, f32 accum).

    x_ref : [tm, E]    input rows (bf16 or f32; upcast in-register)
    g_ref : [1, E]     LayerNorm gamma (f32)
    b_ref : [1, E]     LayerNorm beta  (f32)
    w_ref : [E, Np]    bf16 weight, zero-padded to lane-dense width Np (=128)
    wb_ref: [1, Np]    f32 bias, zero-padded
    o_ref : [tm, Np]   bf16 lane-dense output (real logits live in [:, :3])
    """
    x = x_ref[...].astype(jnp.float32)

    # One-pass LN statistics (independent reductions can overlap on the XLU).
    mean = jnp.mean(x, axis=-1, keepdims=True)
    mean_sq = jnp.mean(x * x, axis=-1, keepdims=True)
    var = jnp.maximum(mean_sq - mean * mean, 0.0)       # biased var (PyTorch LN)
    inv = jax.lax.rsqrt(var + LN_EPS)
    h = (x - mean) * inv * g_ref[...] + b_ref[...]      # f32 LayerNorm output

    # MXU matmul: bf16 operands, f32 accumulation.
    y = jnp.dot(h.astype(jnp.bfloat16), w_ref[...],
                preferred_element_type=jnp.float32)
    o_ref[...] = (y + wb_ref[...]).astype(o_ref.dtype)


# ------------------------------ host wrapper ------------------------------
def linear_classifier(x, ln_gamma, ln_beta, w_pad, b_pad, *,
                      num_classes=NUM_CLASSES, block_rows=512):
    """x: [..., E] -> logits [..., num_classes] via fused LN + Linear kernel.

    ln_gamma/ln_beta: [1, E] f32; w_pad: [E, Np] bf16; b_pad: [1, Np] f32
    (prepared once by prepare_params()).
    """
    lead = x.shape[:-1]
    E = x.shape[-1]
    n_pad = w_pad.shape[1]
    x2 = x.reshape(-1, E)                   # no dtype cast, no row padding
    M = x2.shape[0]

    # Row tile: multiple of ROW_ALIGN, capped by block_rows (>=1024 would
    # start brushing v5e's 16 MiB default scoped VMEM). Keep >=2 grid steps
    # when possible so both v7x TensorCores participate.
    tm = min(block_rows, _round_up(M, ROW_ALIGN))
    if pl.cdiv(M, tm) < 2 and M > ROW_ALIGN:
        tm = _round_up(pl.cdiv(M, 2), ROW_ALIGN)
    grid_m = pl.cdiv(M, tm)                 # ragged last block handled by Pallas

    out = pl.pallas_call(
        _ln_linear_kernel,
        out_shape=jax.ShapeDtypeStruct((M, n_pad), jnp.bfloat16),
        grid=(grid_m,),
        in_specs=[
            pl.BlockSpec((tm, E), lambda i: (i, 0)),
            pl.BlockSpec((1, E), lambda i: (0, 0)),
            pl.BlockSpec((1, E), lambda i: (0, 0)),
            pl.BlockSpec((E, n_pad), lambda i: (0, 0)),
            pl.BlockSpec((1, n_pad), lambda i: (0, 0)),
        ],
        out_specs=pl.BlockSpec((tm, n_pad), lambda i: (i, 0)),
        compiler_params=pltpu.CompilerParams(
            dimension_semantics=("parallel",)),
    )(x2, ln_gamma, ln_beta, w_pad, b_pad)

    return out[:, :num_classes].astype(jnp.float32).reshape(*lead, num_classes)


# --------------------------- deterministic init ---------------------------
def init_params(key):
    kw, kb = jax.random.split(key)
    return {
        "ln_g": jnp.ones((EMBED_SIZE,), jnp.float32),
        "ln_b": jnp.zeros((EMBED_SIZE,), jnp.float32),
        # stored as [E, N] == torch linear.weight.T
        "w": 0.02 * jax.random.normal(kw, (EMBED_SIZE, NUM_CLASSES), jnp.float32),
        "b": 0.02 * jax.random.normal(kb, (NUM_CLASSES,), jnp.float32),
    }


def prepare_params(params):
    """One-time kernel-side layout prep (lane-pad + bf16 pre-cast)."""
    E, N = params["w"].shape
    n_pad = max(LANE, _round_up(N, LANE))
    w_p = jnp.zeros((E, n_pad), jnp.bfloat16).at[:, :N].set(
        params["w"].astype(jnp.bfloat16))
    b_p = jnp.zeros((1, n_pad), jnp.float32).at[:, :N].set(
        params["b"].astype(jnp.float32))
    return {
        "ln_g": params["ln_g"].reshape(1, E).astype(jnp.float32),
        "ln_b": params["ln_b"].reshape(1, E).astype(jnp.float32),
        "w_pad": w_p,
        "b_pad": b_p,
    }


@jax.jit
def forward(x, prep):
    return linear_classifier(x, prep["ln_g"], prep["ln_b"],
                             prep["w_pad"], prep["b_pad"])


if __name__ == "__main__":
    root = jax.random.PRNGKey(0)
    pkey, xkey = jax.random.split(root)
    params = init_params(pkey)
    prep = prepare_params(params)       # hoisted out of the per-call path

    # Batch of "class-token" feature vectors [B, EMBED_SIZE] in bf16 so the
    # dominant HBM stream is half-width; B=250 exercises the ragged last block
    # and a 2-step parallel grid.
    B = 250
    x = jax.random.normal(xkey, (B, EMBED_SIZE), dtype=jnp.bfloat16)

    out = forward(x, prep)
    out = jax.block_until_ready(out)
    assert out.shape == (B, NUM_CLASSES) and out.dtype == jnp.float32
    assert bool(jnp.all(jnp.isfinite(out)))

    # Lightweight parity check vs a pure-JAX f32 reference on the same inputs.
    xf = x.astype(jnp.float32)
    mu = xf.mean(-1, keepdims=True)
    var = ((xf - mu) ** 2).mean(-1, keepdims=True)
    h = (xf - mu) * jax.lax.rsqrt(var + LN_EPS) * params["ln_g"] + params["ln_b"]
    ref = h @ params["w"] + params["b"]
    assert bool(jnp.max(jnp.abs(out - ref)) < 5e-2)

    print("KERNEL_OK")
</pallas_src>

<mosaic_0001>
module attributes {stable_mosaic.version = 11 : i64} {
  func.func @_ln_linear_kernel(%arg0: i32, %arg1: memref<128x768xbf16, #tpu.memory_space<vmem>>, %arg2: memref<1x768xf32, #tpu.memory_space<vmem>>, %arg3: memref<1x768xf32, #tpu.memory_space<vmem>>, %arg4: memref<768x128xbf16, #tpu.memory_space<vmem>>, %arg5: memref<1x128xf32, #tpu.memory_space<vmem>>, %arg6: memref<128x128xbf16, #tpu.memory_space<vmem>>) attributes {dimension_semantics = [#tpu.dimension_semantics<parallel>], iteration_bounds = array<i64: 2>, scalar_prefetch = 0 : i64, scratch_operands = 0 : i64, tpu.core_type = #tpu.core_type<tc>, window_params = [{transform_indices = @transform_0, window_bounds = array<i64: 128, 768>}, {pipeline_mode = #tpu.pipeline_mode<synchronous>, transform_indices = @transform_1, window_bounds = array<i64: 1, 768>}, {pipeline_mode = #tpu.pipeline_mode<synchronous>, transform_indices = @transform_2, window_bounds = array<i64: 1, 768>}, {pipeline_mode = #tpu.pipeline_mode<synchronous>, transform_indices = @transform_3, window_bounds = array<i64: 768, 128>}, {pipeline_mode = #tpu.pipeline_mode<synchronous>, transform_indices = @transform_4, window_bounds = array<i64: 1, 128>}, {transform_indices = @transform_5, window_bounds = array<i64: 128, 128>}]} {
    %c0 = arith.constant 0 : index
    %c0_0 = arith.constant 0 : index
    %0 = vector.load %arg1[%c0, %c0_0] : memref<128x768xbf16, #tpu.memory_space<vmem>>, vector<128x768xbf16>
    %1 = arith.extf %0 : vector<128x768xbf16> to vector<128x768xf32>
    %cst = arith.constant dense<0.000000e+00> : vector<128xf32>
    %2 = vector.multi_reduction <add>, %1, %cst [1] : vector<128x768xf32> to vector<128xf32>
    %3 = vector.shape_cast %2 : vector<128xf32> to vector<128x1xf32>
    %cst_1 = arith.constant 7.680000e+02 : f32
    %4 = vector.broadcast %cst_1 : f32 to vector<128x1xf32>
    %5 = arith.divf %3, %4 : vector<128x1xf32>
    %6 = arith.mulf %1, %1 : vector<128x768xf32>
    %cst_2 = arith.constant dense<0.000000e+00> : vector<128xf32>
    %7 = vector.multi_reduction <add>, %6, %cst_2 [1] : vector<128x768xf32> to vector<128xf32>
    %8 = vector.shape_cast %7 : vector<128xf32> to vector<128x1xf32>
    %cst_3 = arith.constant 7.680000e+02 : f32
    %9 = vector.broadcast %cst_3 : f32 to vector<128x1xf32>
    %10 = arith.divf %8, %9 : vector<128x1xf32>
    %11 = arith.mulf %5, %5 : vector<128x1xf32>
    %12 = arith.subf %10, %11 : vector<128x1xf32>
    %cst_4 = arith.constant 0.000000e+00 : f32
    %13 = vector.broadcast %cst_4 : f32 to vector<128x1xf32>
    %14 = arith.maximumf %12, %13 : vector<128x1xf32>
    %cst_5 = arith.constant 9.99999974E-6 : f32
    %15 = vector.broadcast %cst_5 : f32 to vector<128x1xf32>
    %16 = arith.addf %14, %15 : vector<128x1xf32>
    %17 = math.rsqrt %16 : vector<128x1xf32>
    %18 = vector.broadcast %5 : vector<128x1xf32> to vector<128x768xf32>
    %19 = arith.subf %1, %18 : vector<128x768xf32>
    %20 = vector.broadcast %17 : vector<128x1xf32> to vector<128x768xf32>
    %21 = arith.mulf %19, %20 : vector<128x768xf32>
    %c0_6 = arith.constant 0 : index
    %c0_7 = arith.constant 0 : index
    %22 = vector.load %arg2[%c0_6, %c0_7] : memref<1x768xf32, #tpu.memory_space<vmem>>, vector<1x768xf32>
    %23 = vector.broadcast %22 : vector<1x768xf32> to vector<128x768xf32>
    %24 = arith.mulf %21, %23 : vector<128x768xf32>
    %c0_8 = arith.constant 0 : index
    %c0_9 = arith.constant 0 : index
    %25 = vector.load %arg3[%c0_8, %c0_9] : memref<1x768xf32, #tpu.memory_space<vmem>>, vector<1x768xf32>
    %26 = vector.broadcast %25 : vector<1x768xf32> to vector<128x768xf32>
    %27 = arith.addf %24, %26 : vector<128x768xf32>
    %28 = arith.truncf %27 : vector<128x768xf32> to vector<128x768xbf16>
    %c0_10 = arith.constant 0 : index
    %c0_11 = arith.constant 0 : index
    %29 = vector.load %arg4[%c0_10, %c0_11] : memref<768x128xbf16, #tpu.memory_space<vmem>>, vector<768x128xbf16>
    %cst_12 = arith.constant dense<0.000000e+00> : vector<128x128xf32>
    %30 = tpu.matmul %28, %29, %cst_12 {dimension_numbers = #tpu.dot_dimension_numbers<[1], [0], [0], [1], [0, 0, 1, 1], [], []>} : vector<128x768xbf16>, vector<768x128xbf16>, vector<128x128xf32> -> vector<128x128xf32>
    %c0_13 = arith.constant 0 : index
    %c0_14 = arith.constant 0 : index
    %31 = vector.load %arg5[%c0_13, %c0_14] : memref<1x128xf32, #tpu.memory_space<vmem>>, vector<1x128xf32>
    %32 = vector.broadcast %31 : vector<1x128xf32> to vector<128x128xf32>
    %33 = arith.addf %30, %32 : vector<128x128xf32>
    %34 = arith.truncf %33 : vector<128x128xf32> to vector<128x128xbf16>
    %c0_15 = arith.constant 0 : index
    %c0_16 = arith.constant 0 : index
    %35 = vector.load %arg6[%c0_15, %c0_16] : memref<128x128xbf16, #tpu.memory_space<vmem>>, vector<128x128xbf16>
    tpu.vector_store %arg6[%c0_15, %c0_16], %34 {strides = array<i32>} : memref<128x128xbf16, #tpu.memory_space<vmem>>, vector<128x128xbf16>,
    return
  }
  func.func @transform_0(%arg0: i32) -> (i32, i32) {
    %c0_i32 = arith.constant 0 : i32
    %c0_i32_0 = arith.constant 0 : i32
    return %arg0, %c0_i32 : i32, i32
  }
  func.func @transform_1(%arg0: i32) -> (i32, i32) {
    %c0_i32 = arith.constant 0 : i32
    %c0_i32_0 = arith.constant 0 : i32
    %c0_i32_1 = arith.constant 0 : i32
    return %c0_i32, %c0_i32_0 : i32, i32
  }
  func.func @transform_2(%arg0: i32) -> (i32, i32) {
    %c0_i32 = arith.constant 0 : i32
    %c0_i32_0 = arith.constant 0 : i32
    %c0_i32_1 = arith.constant 0 : i32
    return %c0_i32, %c0_i32_0 : i32, i32
  }
  func.func @transform_3(%arg0: i32) -> (i32, i32) {
    %c0_i32 = arith.constant 0 : i32
    %c0_i32_0 = arith.constant 0 : i32
    %c0_i32_1 = arith.constant 0 : i32
    return %c0_i32, %c0_i32_0 : i32, i32
  }
  func.func @transform_4(%arg0: i32) -> (i32, i32) {
    %c0_i32 = arith.constant 0 : i32
    %c0_i32_0 = arith.constant 0 : i32
    %c0_i32_1 = arith.constant 0 : i32
    return %c0_i32, %c0_i32_0 : i32, i32
  }
  func.func @transform_5(%arg0: i32) -> (i32, i32) {
    %c0_i32 = arith.constant 0 : i32
    %c0_i32_0 = arith.constant 0 : i32
    return %arg0, %c0_i32 : i32, i32
  }
}

</mosaic_0001>

<bundles_post_ra>
// kernel: forward.1
= control target key start
LH: loop header
LB: loop body
LE: loop exit
PB: predicated region body
PF: predicated region fallthrough
CT: control target
= control target key end

     0   :  { %10 = vsyncpa [#allocation3], 0  ;;  %s4666_s0 = inlined_call_operand.hbm [shape: bf16[250,768], index: 0, kind: input, shape index: {}]   ;;  %s4667_s1 = inlined_call_operand.vmem [shape: f32[1,768], index: 1, kind: input, shape index: {}]   ;;  %s4668_s2 = inlined_call_operand.hbm [shape: f32[1,768], index: 2, kind: input, shape index: {}]   ;;  %s4669_s3 = inlined_call_operand.hbm [shape: bf16[768,128], index: 3, kind: input, shape index: {}]   ;;  %s4670_s4 = inlined_call_operand.vmem [shape: f32[1,128], index: 4, kind: input, shape index: {}]   ;;  %s4671_s5 = inlined_call_operand.vmem [shape: bf16[250,128], index: 5, kind: output, shape index: {}]  }
   0x1   :  { %12 = vsyncpa [#allocation3 + $0x1], 0 }
   0x2   :  { %13 = vsyncpa [#allocation5], 0  ;;  %s2859_s18 = smov 0   ;;  %s2861_s19 = smov 0  }
   0x3   :  { %s2863_s20 = smov 0   ;;  %s2865_s21 = smov 0  }
   0x4 LB: > { %s2197_s22 = sadd.s32 4294967295, %s2820_s21   ;;  %s2879_s23 = sadd.s32 1, %s2820_s21   ;;  %s2820_s21 = sphi %s2865_s21, %s5113_s21   ;;  %s2816_s20 = sphi %s2863_s20, %s5112_s20   ;;  %s2812_s19 = sphi %s2861_s19, %s5111_s19   ;;  %s2808_s18 = sphi %s2859_s18, %s5110_s18  }
   0x5   : > { %s23_s24 = ssub.s32 %s2820_s21, %s2879_s23  ;;  %s26_s25 = sadd.s32 1, %s2816_s20 }
   0x6   : > { %p24_p0 = scmp.eq.s32.totalorder %s23_s24, 0  ;;  %p33_p1 = scmp.ne.s32.totalorder %s2816_s20, %s2812_s19 }
   0x7   : > { %p34_p2 = scmp.eq.s32.totalorder %s2820_s21, 0  ;;  %p39_p3 = scmp.ne.s32.totalorder %s2812_s19, %s2808_s18 }
   0x8   : > { %s2889_s26 = scalar_select %p24_p0, %s2816_s20, %s26_s25  }
   0x9   : > { %p2891_p4 = por %p34_p2, %p33_p1  ;;  %p2897_p5 = scmp.eq.s32.totalorder %s2197_s22, 0 }
   0xa   : > { %p2199_p6 = scmp.ge.s32.totalorder %s2820_s21, 1  ;;  %p160_p7 = scmp.lt.s32.totalorder %s2820_s21, 3 }
   0xb   : > { %s4822_s28 = scalar_select %p2897_p5, 1, 0 }
   0xc   : > { %p2905_p8 = por %p2897_p5, %p39_p3  ;;  %p2909_p9 = pnand %p2199_p6, %p160_p7 }
   0xd   : > { %s2822_s6 = smov [#allocation4]   ;;  %p2575_p11 = scmp.lt.s32.totalorder %s2820_s21, 2 }
   0xe   : > { %s4823_s29 = scalar_select %p2905_p8, 1, 0 }
   0xf   : > { %s4824_s30 = scalar_select %p2909_p9, 1, 0 }
  0x10   : > { %s176_s7 = sshll.u32 %s2822_s6, 4  ;;  %p2562_p10 = pneg %p2909_p9  ;;  %s177_s7 = int_to_ptr.vmem [resolvable:$true] %s176_s7 }
  0x11   : > { %s2823_s9 = smov [#allocation6]   ;;  %p2924_p13 = pnand %p2575_p11, %p2891_p4 }
  0x12   : > { %p2918_p12 = pnand %p2562_p10, %p2897_p5  ;;  %s186_s10 = sshll.u32 %s2823_s9, 4  ;;  %s2928_s10 = int_to_ptr.vmem [resolvable:$true] %s186_s10 }
  0x13   : > { %s4826_s11 = scalar_select %p2924_p13, 1, 0 }
  0x14   : > { %s2696_s14 = scalar_lea.hbm %s4668_s2, 96  ;;  %p2698_p1 = pneg %p2918_p12 }
  0x15   : > { %p2697_p0 = scmp.ne.s32.totalorder %s4668_s2, %s2696_s14  ;;  %p2703_p4 = scmp.lt.u32.totalorder %s2696_s14, %s4668_s2 }
  0x17   : > { %p2699_p2 = pnand %p2698_p1, %p2697_p0 }
  0x19   : > { %p2700_p3 = pneg %p2699_p2 }
  0x1b   : > { %p2705_p6 = pnand %p2703_p4, %p2700_p3 }
  0x1d   : > { %2708 = shalt.err (!%p2705_p6)
}
  0x1e   : > { %s2709_s24 = scalar_lea.vmem %s177_s7, 96  ;;  %p2717_p5 = scmp.lt.s32.totalorder %s177_s7, %s177_s7 }
  0x1f   : > { %p2710_p7 = scmp.ne.s32.totalorder %s177_s7, %s2709_s24  ;;  %p2718_p8 = scmp.lt.s32.totalorder %s2709_s24, %s2709_s24 }
  0x21   : > { %p2712_p10 = pnand %p2710_p7, %p2698_p1  ;;  %p2719_p9 = por %p2718_p8, %p2717_p5 }
  0x23   : > { %p2713_p11 = pneg %p2712_p10 }
  0x25   : > { %p2720_p13 = pnand %p2719_p9, %p2713_p11 }
  0x27   : > { %2723 = shalt.err (!%p2720_p13)
}
  0x28   : > { %2565 = dma.hbm_to_vmem [thread:$0]  (!%p2918_p12), %s4668_s2, 96, %s177_s7, [#allocation5]  }
  0x29   : > { %s2724_s12 = scalar_lea.hbm %s4669_s3, 6144 }
  0x2a   : > { %p2725_p0 = scmp.ne.s32.totalorder %s4669_s3, %s2724_s12  ;;  %p2731_p9 = scmp.lt.u32.totalorder %s2724_s12, %s4669_s3 }
  0x2c   : > { %p2727_p5 = pnand %p2725_p0, %p2698_p1 }
  0x2e   : > { %p2728_p8 = pneg %p2727_p5 }
  0x30   : > { %p2733_p13 = pnand %p2731_p9, %p2728_p8 }
  0x32   : > { %2736 = shalt.err (!%p2733_p13)
}
  0x33   : > { %s2737_s7 = scalar_lea.vmem %s2928_s10, 6144  ;;  %p2745_p6 = scmp.lt.s32.totalorder %s2928_s10, %s2928_s10 }
  0x34   : > { %p2738_p2 = scmp.ne.s32.totalorder %s2928_s10, %s2737_s7  ;;  %p2746_p7 = scmp.lt.s32.totalorder %s2737_s7, %s2737_s7 }
  0x36   : > { %p2740_p3 = pnand %p2738_p2, %p2698_p1  ;;  %p2747_p10 = por %p2746_p7, %p2745_p6 }
  0x38   : > { %p2741_p4 = pneg %p2740_p3 }
  0x3a   : > { %p2748_p11 = pnand %p2747_p10, %p2741_p4 }
  0x3c   : > { %2751 = shalt.err (!%p2748_p11)
}
  0x3d   : > { %s2824_s17 = smov 64   ;;  %s2825_s18 = smov 4  }
  0x3e   : > { %2568 = dma.hbm_to_vmem [thread:$0]  (!%p2918_p12), %s4669_s3, 6144, %s2928_s10, [#allocation5], %s2824_s17, %s2824_s17, %s2825_s18  }
  0x3f   : > { %s203_s27 = sand.u32 1, %s2816_s20   ;;  %s2550_s6 = smul.u32 6144, %s2820_s21 }
  0x40   : > { %s2549_s9 = smul.u32 384, %s203_s27  ;;  %s2986_s8 = scalar_lea.sflag [#allocation3], %s203_s27 }
  0x41   : > { %s2982_s14 = scalar_lea.hbm %s4666_s0, %s2550_s6  ;;  %p4827_p1 = scmp.ne.s32.totalorder %s4826_s11, 0 }
  0x42   : > { %s207_s15 = scalar_lea.vmem [#allocation2], %s2549_s9  ;;  %s2752_s7 = scalar_lea.hbm %s2982_s14, 6144 }
  0x43   : > { %s215_s16 = sshll.u32 %s207_s15, 4  ;;  %p2753_p12 = scmp.ne.s32.totalorder %s2982_s14, %s2752_s7  ;;  %s2984_s16 = int_to_ptr.vmem [resolvable:$true] %s215_s16 }
  0x44   : > { %p2754_p0 = pneg %p4827_p1  ;;  %s2757_s18 = scalar_lea.hbm %s4666_s0, 12288 }
  0x45   : > { %p2758_p9 = scmp.lt.u32.totalorder %s2982_s14, %s4666_s0  ;;  %p2759_p13 = scmp.lt.u32.totalorder %s2757_s18, %s2752_s7 }
  0x46   : > { %p2755_p5 = pnand %p2754_p0, %p2753_p12  ;;  %p2761_p3 = scmp.lt.u32.totalorder %s2752_s7, %s2982_s14 }
  0x47   : > { %p2760_p2 = por %p2759_p13, %p2758_p9 }
  0x48   : > { %p2756_p8 = pneg %p2755_p5 }
  0x49   : > { %p2762_p4 = por %p2761_p3, %p2760_p2 }
  0x4b   : > { %p2763_p6 = pnand %p2762_p4, %p2756_p8 }
  0x4d   : > { %2766 = shalt.err (!%p2763_p6)
}
  0x4e   : > { %s2767_s27 = scalar_lea.vmem %s2984_s16, 6144  ;;  %s2826_s6 = smov [#allocation2]  }
  0x4f   : > { %p2768_p7 = scmp.ne.s32.totalorder %s2984_s16, %s2767_s27  ;;  %s2772_s9 = sshll.u32 %s2826_s6, 4  ;;  %s2773_s9 = int_to_ptr.vmem [resolvable:$false] %s2772_s9 }
  0x50   : > { %s2774_s12 = scalar_lea.vmem %s2773_s9, 12288  ;;  %p2775_p12 = scmp.lt.s32.totalorder %s2984_s16, %s2773_s9 }
  0x51   : > { %p2770_p10 = pnand %p2768_p7, %p2754_p0  ;;  %p2776_p5 = scmp.lt.s32.totalorder %s2774_s12, %s2767_s27 }
  0x53   : > { %p2771_p11 = pneg %p2770_p10  ;;  %p2777_p9 = por %p2776_p5, %p2775_p12 }
  0x55   : > { %p2778_p13 = pnand %p2777_p9, %p2771_p11 }
  0x57   : > { %2781 = shalt.err (!%p2778_p13)
}
  0x58   : > { %s2827_s13 = smov 384   ;;  %s2828_s15 = smov 24  }
  0x59   : > { %2572 = dma.hbm_to_vmem [thread:$0]  (!%p4827_p1), %s2982_s14, 6144, %s2984_s16, %s2986_s8, %s2827_s13, %s2827_s13, %s2828_s15  }
  0x5a   : > { %p4828_p0 = scmp.ne.s32.totalorder %s4824_s30, 0 }
  0x5c   : > { %227 = sbr.rel (%p4828_p0) target bundleno = 667 (0x29b), region = 40 }
  0x63   : > { %s229_s7 = sand.u32 1, %s2812_s19   ;;  %p4829_p8 = scmp.ne.s32.totalorder %s4823_s29, 0 }
  0x64   : > { %s2551_s10 = smul.u32 384, %s229_s7  ;;  %s230_s17 = scalar_lea.sflag [#allocation3], %s229_s7 }
  0x66   : > { %s3017_s18 = scalar_lea.vmem [#allocation2], %s2551_s10 }
  0x67   : > { %2799 = dma.done.wait (%p4829_p8), %s230_s17, 6144  }
  0x68   : > { %2801 = vsyncadd (%p4829_p8), %s230_s17, 4294961152  ;;  %p4830_p2 = scmp.ne.s32.totalorder %s4822_s28, 0 }
  0x6a   : > { %2803 = dma.done.wait (%p4830_p2), [#allocation5], 6240  }
  0x6b   : > { %2805 = vsyncadd (%p4830_p2), [#allocation5], 4294961056  ;;  %v300_v0 = vld [vmem:[%s3017_s18 + $0xc0] sm:$0xff]  ;;  %v301_v1 = vld [vmem:[%s3017_s18 + $0xc8] sm:$0xff]  ;;  %s2209_s30 = sshll.u32 %s2197_s22, 4 }
  0x6c   : > { %v302_v2 = vld [vmem:[%s3017_s18 + $0xd0] sm:$0xff]  ;;  %v3030_v3 = vunpack.c.l.bf16 %v300_v0  ;;  %v3032_v4 = vunpack.c.h.bf16 %v300_v0  ;;  %v3034_v5 = vunpack.c.l.bf16 %v301_v1  ;;  %v276_v6 = vld [vmem:[%s3017_s18] sm:$0xff]  ;;  %v277_v7 = vld [vmem:[%s3017_s18 + $0x8] sm:$0xff]  ;;  %v3038_v8 = vunpack.c.h.bf16 %v301_v1  ;;  %p270_p1 = scmp.lt.s32.totalorder %s2209_s30, 31 }
  0x6d   : > { %v278_v9 = vld [vmem:[%s3017_s18 + $0x10] sm:$0xff]  ;;  %v3041_v10 = vunpack.c.l.bf16 %v276_v6  ;;  %v3043_v11 = vunpack.c.h.bf16 %v276_v6  ;;  %v303_v12 = vld [vmem:[%s3017_s18 + $0xd8] sm:$0xff]  ;;  %v304_v13 = vld [vmem:[%s3017_s18 + $0xe0] sm:$0xff]  ;;  %v3047_v14 = vunpack.c.l.bf16 %v302_v2  ;;  %v3049_v15 = vunpack.c.h.bf16 %v302_v2 }
  0x6e   : > { %4831 = vst [vmem:[#allocation9_spill] sm:$0xff] %v3034_v5  ;;  %v476_v16 = vadd.f32 %v3032_v4, %v3030_v3  ;;  %v3053_v17 = vunpack.c.l.bf16 %v277_v7  ;;  %v279_v18 = vld [vmem:[%s3017_s18 + $0x18] sm:$0xff]  ;;  %v3056_v19 = vunpack.c.h.bf16 %v277_v7  ;;  %v305_v21 = vld [vmem:[%s3017_s18 + $0xe8] sm:$0xff]  ;;  %v3061_v22 = vunpack.c.l.bf16 %v303_v12  ;;  %v280_v24 = vld [vmem:[%s3017_s18 + $0x20] sm:$0xff]  ;;  %s5115_s30 = smov (!%p270_p1, %s2209_s30), 31 }
  0x6f   : > { %4832 = vst [vmem:[#allocation10_spill] sm:$0xff] %v3047_v14  ;;  %4833 = vst [vmem:[#allocation11_spill] sm:$0xff] %v3049_v15  ;;  %v420_v20 = vadd.f32 %v3043_v11, %v3041_v10  ;;  %v3063_v23 = vunpack.c.h.bf16 %v303_v12  ;;  %v3067_v26 = vunpack.c.l.bf16 %v278_v9  ;;  %v3069_v27 = vunpack.c.h.bf16 %v278_v9  ;;  %v306_v33 = vld [vmem:[%s3017_s18 + $0xf0] sm:$0xff]  ;;  %v281_v36 = vld [vmem:[%s3017_s18 + $0x28] sm:$0xff]  ;;  %s2210_s21 = sshll.u32 %s5115_s30, 2 }
  0x70   : > { %4834 = vst [vmem:[#allocation12_spill] sm:$0xff] %v3061_v22  ;;  %v477_v25 = vadd.f32 %v476_v16, %v3034_v5  ;;  %v3071_v28 = vunpack.c.l.bf16 %v304_v13  ;;  %v3074_v30 = vunpack.c.h.bf16 %v304_v13  ;;  %v3078_v32 = vunpack.c.l.bf16 %v279_v18  ;;  %v307_v39 = vld [vmem:[%s3017_s18 + $0xf8] sm:$0xff]  ;;  %v309_v48 = vld [vmem:[%s3017_s18 + $0x108] sm:$0xff]  ;;  %v308_v52 = vld [vmem:[%s3017_s18 + $0x100] sm:$0xff]  ;;  %s4620_s8 = scalar_lea.vmem %s4671_s5, %s2210_s21 }
  0x71   : > { %4835 = vst [vmem:[#allocation13_spill] sm:$0xff] %v3067_v26  ;;  %v421_v29 = vadd.f32 %v420_v20, %v3053_v17  ;;  %v483_v31 = vadd.f32 %v3063_v23, %v3061_v22  ;;  %v3082_v35 = vunpack.c.l.bf16 %v305_v21  ;;  %v3085_v37 = vunpack.c.h.bf16 %v279_v18  ;;  %v310_v54 = vld [vmem:[%s3017_s18 + $0x110] sm:$0xff]  ;;  %v311_v2 = vld [vmem:[%s3017_s18 + $0x118] sm:$0xff] }
  0x72   : > { %4836 = vst [vmem:[#allocation14_spill] sm:$0xff] %v3071_v28  ;;  %4837 = vst [vmem:[#allocation15_spill] sm:$0xff] %v3074_v30  ;;  %v478_v34 = vadd.f32 %v477_v25, %v3038_v8  ;;  %v3087_v38 = vunpack.c.l.bf16 %v280_v24  ;;  %v3091_v41 = vunpack.c.h.bf16 %v305_v21  ;;  %v3094_v43 = vunpack.c.h.bf16 %v280_v24  ;;  %v282_v63 = vld [vmem:[%s3017_s18 + $0x30] sm:$0xff]  ;;  %v283_v9 = vld [vmem:[%s3017_s18 + $0x38] sm:$0xff] }
  0x73   : > { %4838 = vst [vmem:[#allocation16_spill] sm:$0xff] %v3078_v32  ;;  %4839 = vst [vmem:[#allocation17_spill] sm:$0xff] %v3082_v35  ;;  %v422_v40 = vadd.f32 %v421_v29, %v3056_v19  ;;  %v484_v42 = vadd.f32 %v483_v31, %v3071_v28  ;;  %v427_v45 = vadd.f32 %v3085_v37, %v3078_v32  ;;  %v3099_v46 = vunpack.c.l.bf16 %v306_v33  ;;  %v284_v24 = vld [vmem:[%s3017_s18 + $0x40] sm:$0xff]  ;;  %v285_v31 = vld [vmem:[%s3017_s18 + $0x48] sm:$0xff] }
  0x74   : > { %4840 = vst [vmem:[#allocation18_spill] sm:$0xff] %v3085_v37  ;;  %4841 = vst [vmem:[#allocation19_spill] sm:$0xff] %v3091_v41  ;;  %v479_v44 = vadd.f32 %v478_v34, %v3047_v14  ;;  %v3101_v47 = vunpack.c.h.bf16 %v306_v33  ;;  %v3106_v51 = vunpack.c.l.bf16 %v281_v36  ;;  %v3109_v53 = vunpack.c.l.bf16 %v307_v39  ;;  %v286_v33 = vld [vmem:[%s3017_s18 + $0x50] sm:$0xff] }
  0x75   : > { %v423_v49 = vadd.f32 %v422_v40, %v3067_v26  ;;  %v485_v50 = vadd.f32 %v484_v42, %v3074_v30  ;;  %v3113_v56 = vunpack.c.h.bf16 %v281_v36  ;;  %v428_v57 = vadd.f32 %v427_v45, %v3087_v38 }
  0x76   : > { %4842 = vst [vmem:[#allocation20_spill] sm:$0xff] %v3106_v51  ;;  %4843 = vst [vmem:[#allocation21_spill] sm:$0xff] %v3109_v53  ;;  %v480_v55 = vadd.f32 %v479_v44, %v3049_v15  ;;  %v3116_v58 = vunpack.c.h.bf16 %v307_v39  ;;  %v490_v61 = vadd.f32 %v3101_v47, %v3099_v46  ;;  %v3122_v62 = vunpack.c.l.bf16 %v309_v48 }
  0x77   : > { %v424_v59 = vadd.f32 %v423_v49, %v3069_v27  ;;  %v486_v60 = vadd.f32 %v485_v50, %v3082_v35  ;;  %v429_v0 = vadd.f32 %v428_v57, %v3094_v43  ;;  %v3126_v1 = vunpack.c.l.bf16 %v308_v52  ;;  %v287_v49 = vld [vmem:[%s3017_s18 + $0x58] sm:$0xff] }
  0x78   : > { %4844 = vst [vmem:[#allocation22_spill] sm:$0xff] %v3116_v58  ;;  %481 = vadd.xlane.f32.xlu0 %v480_v55  ;;  %v3129_v6 = vunpack.c.h.bf16 %v309_v48  ;;  %v3131_v7 = vunpack.c.l.bf16 %v310_v54  ;;  %v3135_v13 = vunpack.c.h.bf16 %v308_v52  ;;  %v491_v16 = vadd.f32 %v490_v61, %v3109_v53 }
  0x79   : > { %4845 = vst [vmem:[#allocation23_spill] sm:$0xff] %v3126_v1  ;;  %425 = vadd.xlane.f32.xlu1 %v424_v59  ;;  %v487_v12 = vadd.f32 %v486_v60, %v3091_v41  ;;  %v3138_v18 = vunpack.c.h.bf16 %v310_v54  ;;  %v430_v20 = vadd.f32 %v429_v0, %v3106_v51  ;;  %v3144_v25 = vunpack.c.l.bf16 %v282_v63 }
  0x7a   : > { %4846 = vst [vmem:[#allocation24_spill] sm:$0xff] %v3131_v7  ;;  %4847 = vst [vmem:[#allocation25_spill] sm:$0xff] %v3135_v13  ;;  %v497_v21 = vadd.f32 %v3129_v6, %v3122_v62  ;;  %v3146_v29 = vunpack.c.h.bf16 %v282_v63  ;;  %v492_v34 = vadd.f32 %v491_v16, %v3116_v58  ;;  %v3151_v36 = vunpack.c.l.bf16 %v311_v2 }
  0x7b   : > { %4848 = vst [vmem:[#allocation26_spill] sm:$0xff] %v3138_v18  ;;  %4849 = vst [vmem:[#allocation27_spill] sm:$0xff] %v3144_v25  ;;  %v3153_v39 = vunpack.c.h.bf16 %v311_v2  ;;  %v3155_v40 = vunpack.c.l.bf16 %v283_v9  ;;  %v431_v42 = vadd.f32 %v430_v20, %v3113_v56  ;;  %v3159_v45 = vunpack.c.h.bf16 %v283_v9 }
  0x7c   : > { %4850 = vst [vmem:[#allocation28_spill] sm:$0xff] %v3146_v29  ;;  %4851 = vst [vmem:[#allocation29_spill] sm:$0xff] %v3151_v36  ;;  %488 = vadd.xlane.f32.xlu0 %v487_v12  ;;  %v498_v44 = vadd.f32 %v497_v21, %v3131_v7  ;;  %v434_v48 = vadd.f32 %v3146_v29, %v3144_v25  ;;  %v493_v50 = vadd.f32 %v492_v34, %v3126_v1 }
  0x7d   : > { %4852 = vst [vmem:[#allocation30_spill] sm:$0xff] %v3153_v39  ;;  %4853 = vst [vmem:[#allocation31_spill] sm:$0xff] %v3155_v40  ;;  %v3165_v52 = vunpack.c.l.bf16 %v285_v31  ;;  %v3167_v54 = vunpack.c.h.bf16 %v285_v31  ;;  %v3169_v55 = vunpack.c.l.bf16 %v286_v33  ;;  %432 = vadd.xlane.f32.xlu1 %v431_v42  ;;  %v3172_v59 = vunpack.c.l.bf16 %v284_v24 }
  0x7e   : > { %4854 = vst [vmem:[#allocation32_spill] sm:$0xff] %v3159_v45  ;;  %v499_v57 = vadd.f32 %v498_v44, %v3138_v18  ;;  %v3174_v60 = vunpack.c.h.bf16 %v284_v24  ;;  %v435_v61 = vadd.f32 %v434_v48, %v3155_v40  ;;  %v494_v63 = vadd.f32 %v493_v50, %v3135_v13 }
  0x7f   : > { %4855 = vst [vmem:[#allocation33_spill] sm:$0xff] %v3165_v52  ;;  %4856 = vst [vmem:[#allocation34_spill] sm:$0xff] %v3167_v54  ;;  %v3178_v0 = vunpack.c.h.bf16 %v286_v33  ;;  %v441_v2 = vadd.f32 %v3167_v54, %v3165_v52  ;;  %v597_v9 = vmul.f32 %v3030_v3, %v3030_v3  ;;  %v598_v20 = vmul.f32 %v3032_v4, %v3032_v4 }
  0x80   : > { %4857 = vst [vmem:[#allocation35_spill] sm:$0xff] %v3169_v55  ;;  %4858 = vst [vmem:[#allocation36_spill] sm:$0xff] %v3172_v59  ;;  %v500_v12 = vadd.f32 %v499_v57, %v3151_v36  ;;  %v436_v16 = vadd.f32 %v435_v61, %v3159_v45  ;;  %v599_v21 = vmul.f32 %v3034_v5, %v3034_v5  ;;  %495 = vadd.xlane.f32.xlu0 %v494_v63 }
  0x81   : > { %4859 = vst [vmem:[#allocation37_spill] sm:$0xff] %v3174_v60  ;;  %4860 = vst [vmem:[#allocation38_spill] sm:$0xff] %v3178_v0  ;;  %v3190_v24 = vunpack.c.l.bf16 %v287_v49  ;;  %v3192_v31 = vunpack.c.h.bf16 %v287_v49  ;;  %v442_v33 = vadd.f32 %v441_v2, %v3169_v55  ;;  %v600_v34 = vmul.f32 %v3038_v8, %v3038_v8 }
  0x82   : > { %v501_v42 = vadd.f32 %v500_v12, %v3153_v39  ;;  %v437_v44 = vadd.f32 %v436_v16, %v3172_v59  ;;  %v701_v48 = vadd.f32 %v598_v20, %v597_v9  ;;  %v603_v50 = vmul.f32 %v3061_v22, %v3061_v22 }
  0x83   : > { %4861 = vst [vmem:[#allocation39_spill] sm:$0xff] %v3190_v24  ;;  %4862 = vst [vmem:[#allocation40_spill] sm:$0xff] %v3192_v31  ;;  %v443_v57 = vadd.f32 %v442_v33, %v3178_v0  ;;  %v601_v61 = vmul.f32 %v3047_v14, %v3047_v14  ;;  %v604_v49 = vmul.f32 %v3063_v23, %v3063_v23 }
  0x84   : > { %v605_v63 = vmul.f32 %v3071_v28, %v3071_v28  ;;  %502 = vadd.xlane.f32.xlu1 %v501_v42  ;;  %v438_v2 = vadd.f32 %v437_v44, %v3174_v60  ;;  %v602_v9 = vmul.f32 %v3049_v15, %v3049_v15  ;;  %v702_v12 = vadd.f32 %v701_v48, %v599_v21  ;;  %v4920_v15 = vld [vmem:[#allocation16_spill] sm:$0xff] }
  0x85   : > { %v606_v16 = vmul.f32 %v3074_v30, %v3074_v30  ;;  %v444_v20 = vadd.f32 %v443_v57, %v3190_v24  ;;  %v708_v33 = vadd.f32 %v604_v49, %v603_v50  ;;  %v549_v14 = vmul.f32 %v3041_v10, %v3041_v10 }
  0x86   : > { %v550_v22 = vmul.f32 %v3043_v11, %v3043_v11  ;;  %439 = vadd.xlane.f32.xlu0 %v438_v2  ;;  %v703_v42 = vadd.f32 %v702_v12, %v600_v34  ;;  %v607_v44 = vmul.f32 %v3082_v35, %v3082_v35  ;;  %v608_v21 = vmul.f32 %v3091_v41, %v3091_v41 }
  0x87   : > { %v551_v48 = vmul.f32 %v3053_v17, %v3053_v17  ;;  %v445_v57 = vadd.f32 %v444_v20, %v3192_v31  ;;  %v709_v50 = vadd.f32 %v708_v33, %v605_v63  ;;  %v552_v49 = vmul.f32 %v3056_v19, %v3056_v19 }
  0x88   : > { %v645_v28 = vadd.f32 %v550_v22, %v549_v14  ;;  %v704_v30 = vadd.f32 %v703_v42, %v601_v61  ;;  %v555_v34 = vmul.f32 %v3078_v32, %v3078_v32  ;;  %v556_v2 = vmul.f32 %v3085_v37, %v3085_v37 }
  0x89   : > { %v557_v12 = vmul.f32 %v3087_v38, %v3087_v38  ;;  %446 = vadd.xlane.f32.xlu1 %v445_v57  ;;  %v710_v35 = vadd.f32 %v709_v50, %v606_v16  ;;  %v553_v20 = vmul.f32 %v3067_v26, %v3067_v26  ;;  %v554_v63 = vmul.f32 %v3069_v27, %v3069_v27 }
  0x8a   : > { %v646_v33 = vadd.f32 %v645_v28, %v551_v48  ;;  %v705_v14 = vadd.f32 %v704_v30, %v602_v9  ;;  %v558_v22 = vmul.f32 %v3094_v43, %v3094_v43  ;;  %v652_v61 = vadd.f32 %v556_v2, %v555_v34 }
  0x8b   : > { %v609_v42 = vmul.f32 %v3099_v46, %v3099_v46  ;;  %v711_v32 = vadd.f32 %v710_v35, %v607_v44  ;;  %v610_v16 = vmul.f32 %v3101_v47, %v3101_v47  ;;  %v611_v57 = vmul.f32 %v3109_v53, %v3109_v53 }
  0x8c   : > { %v647_v37 = vadd.f32 %v646_v33, %v552_v49  ;;  %706 = vadd.xlane.f32.xlu0 %v705_v14  ;;  %v559_v28 = vmul.f32 %v3106_v51, %v3106_v51  ;;  %v560_v30 = vmul.f32 %v3113_v56, %v3113_v56  ;;  %v653_v9 = vadd.f32 %v652_v61, %v557_v12 }
  0x8d   : > { %v612_v48 = vmul.f32 %v3116_v58, %v3116_v58  ;;  %v712_v50 = vadd.f32 %v711_v32, %v608_v21  ;;  %v715_v44 = vadd.f32 %v610_v16, %v609_v42  ;;  %v615_v49 = vmul.f32 %v3122_v62, %v3122_v62  ;;  %v312_v16 = vld [vmem:[%s3017_s18 + $0x120] sm:$0xff] }
  0x8e   : > { %v648_v35 = vadd.f32 %v647_v37, %v553_v20  ;;  %v654_v34 = vadd.f32 %v653_v9, %v558_v22  ;;  %v613_v2 = vmul.f32 %v3126_v1, %v3126_v1  ;;  %v616_v33 = vmul.f32 %v3129_v6, %v3129_v6  ;;  %v4925_v1 = vld [vmem:[#allocation28_spill] sm:$0xff] }
  0x8f   : > { %v617_v12 = vmul.f32 %v3131_v7, %v3131_v7  ;;  %713 = vadd.xlane.f32.xlu1 %v712_v50  ;;  %v614_v32 = vmul.f32 %v3135_v13, %v3135_v13  ;;  %v716_v37 = vadd.f32 %v715_v44, %v611_v57  ;;  %v618_v21 = vmul.f32 %v3138_v18, %v3138_v18  ;;  %v313_v50 = vld [vmem:[%s3017_s18 + $0x128] sm:$0xff] }
  0x90   : > { %v649_v14 = vadd.f32 %v648_v35, %v554_v63  ;;  %v655_v20 = vadd.f32 %v654_v34, %v559_v28  ;;  %v722_v22 = vadd.f32 %v616_v33, %v615_v49  ;;  %v561_v61 = vmul.f32 %v3144_v25, %v3144_v25 }
  0x91   : > { %v562_v42 = vmul.f32 %v3146_v29, %v3146_v29  ;;  %v717_v9 = vadd.f32 %v716_v37, %v612_v48  ;;  %v619_v63 = vmul.f32 %v3151_v36, %v3151_v36  ;;  %v620_v57 = vmul.f32 %v3153_v39, %v3153_v39 }
  0x92   : > { %650 = vadd.xlane.f32.xlu0 %v649_v14  ;;  %v563_v28 = vmul.f32 %v3155_v40, %v3155_v40  ;;  %v656_v35 = vadd.f32 %v655_v20, %v560_v30  ;;  %v723_v44 = vadd.f32 %v722_v22, %v617_v12  ;;  %v564_v49 = vmul.f32 %v3159_v45, %v3159_v45  ;;  %v315_v40 = vld [vmem:[%s3017_s18 + $0x138] sm:$0xff]  ;;  %v314_v20 = vld [vmem:[%s3017_s18 + $0x130] sm:$0xff]  ;;  %v316_v22 = vld [vmem:[%s3017_s18 + $0x140] sm:$0xff] }
  0x93   : > { %v659_v34 = vadd.f32 %v562_v42, %v561_v61  ;;  %v718_v33 = vadd.f32 %v717_v9, %v613_v2  ;;  %v567_v48 = vmul.f32 %v3165_v52, %v3165_v52  ;;  %v568_v14 = vmul.f32 %v3167_v54, %v3167_v54 }
  0x94   : > { %v569_v37 = vmul.f32 %v3169_v55, %v3169_v55  ;;  %657 = vadd.xlane.f32.xlu1 %v656_v35  ;;  %v724_v25 = vadd.f32 %v723_v44, %v618_v21  ;;  %v565_v30 = vmul.f32 %v3172_v59, %v3172_v59  ;;  %v566_v12 = vmul.f32 %v3174_v60, %v3174_v60  ;;  %v288_v59 = vld [vmem:[%s3017_s18 + $0x60] sm:$0xff] }
  0x95   : > { %v660_v2 = vadd.f32 %v659_v34, %v563_v28  ;;  %v719_v61 = vadd.f32 %v718_v33, %v614_v32  ;;  %v570_v42 = vmul.f32 %v3178_v0, %v3178_v0  ;;  %v666_v9 = vadd.f32 %v568_v14, %v567_v48  ;;  %v317_v48 = vld [vmem:[%s3017_s18 + $0x148] sm:$0xff] }
  0x96   : > { %v3292_v55 = vunpack.c.l.bf16 %v312_v16  ;;  %v725_v35 = vadd.f32 %v724_v25, %v619_v63  ;;  %v3294_v44 = vunpack.c.h.bf16 %v312_v16  ;;  %v3296_v52 = vunpack.c.l.bf16 %v313_v50  ;;  %v289_v14 = vld [vmem:[%s3017_s18 + $0x68] sm:$0xff] }
  0x97   : > { %v661_v21 = vadd.f32 %v660_v2, %v564_v49  ;;  %720 = vadd.xlane.f32.xlu0 %v719_v61  ;;  %v571_v28 = vmul.f32 %v3190_v24, %v3190_v24  ;;  %v572_v32 = vmul.f32 %v3192_v31, %v3192_v31  ;;  %v667_v34 = vadd.f32 %v666_v9, %v569_v37  ;;  %v2616_v25 = vld [vmem:[#allocation6 + $0x40] sm:$0xff]  }
  0x98   : > { %4863 = vst [vmem:[#allocation41_spill] sm:$0xff] %v3292_v55  ;;  %4864 = vst [vmem:[#allocation42_spill] sm:$0xff] %v3294_v44  ;;  %v3303_v33 = vunpack.c.h.bf16 %v313_v50  ;;  %v2617_v63 = vld [vmem:[#allocation6] sm:$0xff]   ;;  %v726_v16 = vadd.f32 %v725_v35, %v620_v57  ;;  %v504_v2 = vadd.f32 %v3294_v44, %v3292_v55  ;;  %v3309_v61 = vunpack.c.l.bf16 %v315_v40  ;;  %v291_v50 = vld [vmem:[%s3017_s18 + $0x78] sm:$0xff]  ;;  %2533 = vmatprep.subr.bf16.mxu1 %v2616_v25 }
  0x99   : > { %4865 = vst [vmem:[#allocation43_spill] sm:$0xff] %v3296_v52  ;;  %v662_v49 = vadd.f32 %v661_v21, %v565_v30  ;;  %v668_v0 = vadd.f32 %v667_v34, %v570_v42  ;;  %v3311_v24 = vunpack.c.l.bf16 %v314_v20  ;;  %v3313_v54 = vunpack.c.h.bf16 %v315_v40  ;;  %2341 = vmatprep.subr.bf16.mxu0 %v2616_v25  ;;  %2541 = vmatpush3.bf16.msra.mxu1 %v2617_v63  ;;  %v292_v31 = vld [vmem:[%s3017_s18 + $0x80] sm:$0xff] }
  0x9a   : > { %4866 = vst [vmem:[#allocation44_spill] sm:$0xff] %v3303_v33  ;;  %4867 = vst [vmem:[#allocation45_spill] sm:$0xff] %v3309_v61  ;;  %v3315_v37 = vunpack.c.l.bf16 %v316_v22  ;;  %727 = vadd.xlane.f32.xlu1 %v726_v16  ;;  %v3318_v30 = vunpack.c.h.bf16 %v314_v20  ;;  %v505_v9 = vadd.f32 %v504_v2, %v3296_v52  ;;  %v3321_v35 = vunpack.c.h.bf16 %v316_v22  ;;  %2342 = vmatpush3.bf16.msra.mxu0 %v2617_v63  ;;  %v290_v22 = vld [vmem:[%s3017_s18 + $0x70] sm:$0xff] }
  0x9b   : > { %4868 = vst [vmem:[#allocation46_spill] sm:$0xff] %v3311_v24  ;;  %4869 = vst [vmem:[#allocation47_spill] sm:$0xff] %v3313_v54  ;;  %v663_v57 = vadd.f32 %v662_v49, %v566_v12  ;;  %v669_v42 = vadd.f32 %v668_v0, %v571_v28  ;;  %v511_v40 = vadd.f32 %v3313_v54, %v3309_v61  ;;  %v3325_v21 = vunpack.c.l.bf16 %v288_v59 }
  0x9c   : > { %4870 = vst [vmem:[#allocation48_spill] sm:$0xff] %v3315_v37  ;;  %4871 = vst [vmem:[#allocation49_spill] sm:$0xff] %v3318_v30  ;;  %v3327_v34 = vunpack.c.h.bf16 %v288_v59  ;;  %v506_v12 = vadd.f32 %v505_v9, %v3303_v33  ;;  %v3331_v20 = vunpack.c.l.bf16 %v317_v48  ;;  %v3333_v25 = vunpack.c.h.bf16 %v317_v48 }
  0x9d   : > { %4872 = vst [vmem:[#allocation50_spill] sm:$0xff] %v3321_v35  ;;  %4873 = vst [vmem:[#allocation51_spill] sm:$0xff] %v3325_v21  ;;  %664 = vadd.xlane.f32.xlu0 %v663_v57  ;;  %v3336_v16 = vunpack.c.l.bf16 %v289_v14  ;;  %v670_v0 = vadd.f32 %v669_v42, %v572_v32  ;;  %v512_v28 = vadd.f32 %v511_v40, %v3315_v37  ;;  %v3339_v49 = vunpack.c.h.bf16 %v289_v14  ;;  %v293_v42 = vld [vmem:[%s3017_s18 + $0x88] sm:$0xff] }
  0x9e   : > { %4874 = vst [vmem:[#allocation52_spill] sm:$0xff] %v3327_v34  ;;  %4875 = vst [vmem:[#allocation53_spill] sm:$0xff] %v3331_v20  ;;  %v448_v59 = vadd.f32 %v3327_v34, %v3325_v21  ;;  %v507_v63 = vadd.f32 %v506_v12, %v3311_v24  ;;  %v3344_v2 = vunpack.c.l.bf16 %v291_v50  ;;  %v3346_v57 = vunpack.c.h.bf16 %v291_v50 }
  0x9f   : > { %4876 = vst [vmem:[#allocation54_spill] sm:$0xff] %v3333_v25  ;;  %4877 = vst [vmem:[#allocation55_spill] sm:$0xff] %v3336_v16  ;;  %v3348_v48 = vunpack.c.l.bf16 %v292_v31  ;;  %671 = vadd.xlane.f32.xlu1 %v670_v0  ;;  %v513_v9 = vadd.f32 %v512_v28, %v3321_v35  ;;  %v3351_v60 = vunpack.c.l.bf16 %v290_v22  ;;  %v3353_v32 = vunpack.c.h.bf16 %v290_v22 }
  0xa0   : > { %4878 = vst [vmem:[#allocation56_spill] sm:$0xff] %v3339_v49  ;;  %4879 = vst [vmem:[#allocation57_spill] sm:$0xff] %v3344_v2  ;;  %v449_v14 = vadd.f32 %v448_v59, %v3336_v16  ;;  %v508_v40 = vadd.f32 %v507_v63, %v3318_v30  ;;  %v3358_v45 = vunpack.c.h.bf16 %v292_v31  ;;  %v455_v50 = vadd.f32 %v3346_v57, %v3344_v2 }
  0xa1   : > { %4880 = vst [vmem:[#allocation58_spill] sm:$0xff] %v3346_v57  ;;  %4881 = vst [vmem:[#allocation59_spill] sm:$0xff] %v3348_v48  ;;  %v621_v12 = vmul.f32 %v3292_v55, %v3292_v55  ;;  %v514_v0 = vadd.f32 %v513_v9, %v3331_v20  ;;  %v622_v22 = vmul.f32 %v3294_v44, %v3294_v44  ;;  %v3370_v63 = vunpack.c.l.bf16 %v293_v42 }
  0xa2   : > { %4882 = vst [vmem:[#allocation60_spill] sm:$0xff] %v3351_v60  ;;  %4883 = vst [vmem:[#allocation61_spill] sm:$0xff] %v3353_v32  ;;  %v450_v28 = vadd.f32 %v449_v14, %v3339_v49  ;;  %v623_v59 = vmul.f32 %v3296_v52, %v3296_v52  ;;  %509 = vadd.xlane.f32.xlu0 %v508_v40  ;;  %v3372_v31 = vunpack.c.h.bf16 %v293_v42 }
  0xa3   : > { %4884 = vst [vmem:[#allocation62_spill] sm:$0xff] %v3358_v45  ;;  %4885 = vst [vmem:[#allocation63_spill] sm:$0xff] %v3370_v63  ;;  %v456_v29 = vadd.f32 %v455_v50, %v3348_v48  ;;  %v624_v55 = vmul.f32 %v3303_v33, %v3303_v33  ;;  %v515_v9 = vadd.f32 %v514_v0, %v3333_v25  ;;  %v2619_v33 = vld [vmem:[#allocation6 + $0x8] sm:$0xff]  }
  0xa4   : > { %4886 = vst [vmem:[#allocation64_spill] sm:$0xff] %v3372_v31  ;;  %v451_v14 = vadd.f32 %v450_v28, %v3351_v60  ;;  %v729_v36 = vadd.f32 %v622_v22, %v621_v12  ;;  %v627_v44 = vmul.f32 %v3309_v61, %v3309_v61  ;;  %v625_v40 = vmul.f32 %v3311_v24, %v3311_v24 }
  0xa5   : > { %v457_v52 = vadd.f32 %v456_v29, %v3358_v45  ;;  %v628_v42 = vmul.f32 %v3313_v54, %v3313_v54  ;;  %v629_v50 = vmul.f32 %v3315_v37, %v3315_v37  ;;  %516 = vadd.xlane.f32.xlu1 %v515_v9  ;;  %v626_v12 = vmul.f32 %v3318_v30, %v3318_v30  ;;  %v2618_v29 = vld [vmem:[#allocation6 + $0x48] sm:$0xff]  }
  0xa6   : > { %v452_v0 = vadd.f32 %v451_v14, %v3353_v32  ;;  %v730_v28 = vadd.f32 %v729_v36, %v623_v59  ;;  %v630_v22 = vmul.f32 %v3321_v35, %v3321_v35  ;;  %v573_v54 = vmul.f32 %v3325_v21, %v3325_v21  ;;  %v318_v35 = vld [vmem:[%s3017_s18 + $0x150] sm:$0xff]  ;;  %2534 = vmatprep.subr.bf16.mxu1 %v2618_v29 }
  0xa7   : > { %v458_v24 = vadd.f32 %v457_v52, %v3370_v63  ;;  %v736_v61 = vadd.f32 %v628_v42, %v627_v44  ;;  %v574_v9 = vmul.f32 %v3327_v34, %v3327_v34  ;;  %v631_v36 = vmul.f32 %v3331_v20, %v3331_v20  ;;  %2542 = vmatpush3.bf16.msra.mxu1 %v2619_v33 }
  0xa8   : > { %453 = vadd.xlane.f32.xlu0 %v452_v0  ;;  %v731_v14 = vadd.f32 %v730_v28, %v624_v55  ;;  %v632_v59 = vmul.f32 %v3333_v25, %v3333_v25  ;;  %v575_v37 = vmul.f32 %v3336_v16, %v3336_v16  ;;  %v576_v42 = vmul.f32 %v3339_v49, %v3339_v49  ;;  %v319_v25 = vld [vmem:[%s3017_s18 + $0x158] sm:$0xff] }
  0xa9   : > { %v459_v52 = vadd.f32 %v458_v24, %v3372_v31  ;;  %v737_v44 = vadd.f32 %v736_v61, %v629_v50  ;;  %v673_v30 = vadd.f32 %v574_v9, %v573_v54  ;;  %v579_v55 = vmul.f32 %v3344_v2, %v3344_v2  ;;  %v2620_v50 = vld [vmem:[#allocation6 + $0x50] sm:$0xff]   ;;  %v321_v2 = vld [vmem:[%s3017_s18 + $0x168] sm:$0xff]  ;;  %2343 = vmatprep.subr.bf16.mxu0 %v2618_v29 }
  0xaa   : > { %v732_v0 = vadd.f32 %v731_v14, %v625_v40  ;;  %v580_v28 = vmul.f32 %v3346_v57, %v3346_v57  ;;  %v581_v20 = vmul.f32 %v3348_v48, %v3348_v48  ;;  %v577_v54 = vmul.f32 %v3351_v60, %v3351_v60  ;;  %v2621_v9 = vld [vmem:[#allocation6 + $0x10] sm:$0xff]   ;;  %2535 = vmatprep.subr.bf16.mxu1 %v2620_v50  ;;  %v2625_v57 = vld [vmem:[#allocation6 + $0x20] sm:$0xff]  }
  0xab   : > { %460 = vadd.xlane.f32.xlu1 %v459_v52  ;;  %v738_v24 = vadd.f32 %v737_v44, %v630_v22  ;;  %v578_v61 = vmul.f32 %v3353_v32, %v3353_v32  ;;  %v674_v40 = vadd.f32 %v673_v30, %v575_v37  ;;  %v582_v16 = vmul.f32 %v3358_v45, %v3358_v45  ;;  %v320_v44 = vld [vmem:[%s3017_s18 + $0x160] sm:$0xff]  ;;  %v322_v37 = vld [vmem:[%s3017_s18 + $0x170] sm:$0xff]  ;;  %v299_v45 = vld [vmem:[%s3017_s18 + $0xb8] sm:$0xff] }
  0xac   : > { %v733_v14 = vadd.f32 %v732_v0, %v626_v12  ;;  %v680_v48 = vadd.f32 %v580_v28, %v579_v55  ;;  %v3421_v49 = vunpack.c.l.bf16 %v318_v35  ;;  %v3425_v60 = vunpack.c.h.bf16 %v318_v35  ;;  %2344 = vmatpush3.bf16.msra.mxu0 %v2619_v33  ;;  %2543 = vmatpush3.bf16.msra.mxu1 %v2621_v9  ;;  %v294_v33 = vld [vmem:[%s3017_s18 + $0x90] sm:$0xff] }
  0xad   : > { %v739_v22 = vadd.f32 %v738_v24, %v631_v36  ;;  %v675_v52 = vadd.f32 %v674_v40, %v576_v42  ;;  %v3427_v21 = vunpack.c.l.bf16 %v319_v25  ;;  %v583_v30 = vmul.f32 %v3370_v63, %v3370_v63  ;;  %2345 = vmatprep.subr.bf16.mxu0 %v2620_v50  ;;  %v323_v40 = vld [vmem:[%s3017_s18 + $0x178] sm:$0xff] }
  0xae   : > { %4887 = vst [vmem:[#allocation65_spill] sm:$0xff] %v3421_v49  ;;  %4888 = vst [vmem:[#allocation66_spill] sm:$0xff] %v3425_v60  ;;  %734 = vadd.xlane.f32.xlu0 %v733_v14  ;;  %v584_v12 = vmul.f32 %v3372_v31, %v3372_v31  ;;  %v681_v29 = vadd.f32 %v680_v48, %v581_v20  ;;  %v3434_v36 = vunpack.c.h.bf16 %v319_v25  ;;  %v3438_v55 = vunpack.c.l.bf16 %v321_v2  ;;  %v295_v25 = vld [vmem:[%s3017_s18 + $0x98] sm:$0xff] }
  0xaf   : > { %4889 = vst [vmem:[#allocation67_spill] sm:$0xff] %v3427_v21  ;;  %v740_v35 = vadd.f32 %v739_v22, %v632_v59  ;;  %v676_v42 = vadd.f32 %v675_v52, %v577_v54  ;;  %v518_v0 = vadd.f32 %v3425_v60, %v3421_v49  ;;  %v3441_v24 = vunpack.c.l.bf16 %v320_v44  ;;  %v2623_v50 = vld [vmem:[#allocation6 + $0x18] sm:$0xff]  }
  0xb0   : > { %4890 = vst [vmem:[#allocation68_spill] sm:$0xff] %v3434_v36  ;;  %4891 = vst [vmem:[#allocation69_spill] sm:$0xff] %v3438_v55  ;;  %v682_v28 = vadd.f32 %v681_v29, %v582_v16  ;;  %v3444_v14 = vunpack.c.h.bf16 %v321_v2  ;;  %v3446_v20 = vunpack.c.l.bf16 %v322_v37  ;;  %v3449_v59 = vunpack.c.h.bf16 %v320_v44  ;;  %v2622_v16 = vld [vmem:[#allocation6 + $0x58] sm:$0xff]   ;;  %2346 = vmatpush3.bf16.msra.mxu0 %v2621_v9 }
  0xb1   : > { %4892 = vst [vmem:[#allocation70_spill] sm:$0xff] %v3441_v24  ;;  %741 = vadd.xlane.f32.xlu1 %v740_v35  ;;  %v677_v48 = vadd.f32 %v676_v42, %v578_v61  ;;  %v519_v54 = vadd.f32 %v518_v0, %v3427_v21  ;;  %v3452_v22 = vunpack.c.h.bf16 %v322_v37  ;;  %v3456_v29 = vunpack.c.l.bf16 %v294_v33  ;;  %v297_v35 = vld [vmem:[%s3017_s18 + $0xa8] sm:$0xff]  ;;  %v298_v61 = vld [vmem:[%s3017_s18 + $0xb0] sm:$0xff]  ;;  %v296_v0 = vld [vmem:[%s3017_s18 + $0xa0] sm:$0xff]  ;;  %2536 = vmatprep.subr.bf16.mxu1 %v2622_v16 }
  0xb2   : > { %4893 = vst [vmem:[#allocation71_spill] sm:$0xff] %v3444_v14  ;;  %4894 = vst [vmem:[#allocation72_spill] sm:$0xff] %v3446_v20  ;;  %v683_v52 = vadd.f32 %v682_v28, %v583_v30  ;;  %v525_v2 = vadd.f32 %v3444_v14, %v3438_v55  ;;  %v3458_v63 = vunpack.c.h.bf16 %v294_v33  ;;  %v3463_v42 = vunpack.c.l.bf16 %v323_v40  ;;  %2544 = vmatpush3.bf16.msra.mxu1 %v2623_v50 }
  0xb3   : > { %4895 = vst [vmem:[#allocation73_spill] sm:$0xff] %v3449_v59  ;;  %4896 = vst [vmem:[#allocation74_spill] sm:$0xff] %v3452_v22  ;;  %678 = vadd.xlane.f32.xlu0 %v677_v48  ;;  %v520_v44 = vadd.f32 %v519_v54, %v3434_v36  ;;  %v3465_v37 = vunpack.c.h.bf16 %v323_v40  ;;  %v3468_v9 = vunpack.c.l.bf16 %v295_v25  ;;  %v3471_v31 = vunpack.c.h.bf16 %v295_v25  ;;  %2347 = vmatprep.subr.bf16.mxu0 %v2622_v16  ;;  %v2624_v16 = vld [vmem:[#allocation6 + $0x60] sm:$0xff]  }
  0xb4   : > { %4897 = vst [vmem:[#allocation75_spill] sm:$0xff] %v3463_v42  ;;  %v684_v30 = vadd.f32 %v683_v52, %v584_v12  ;;  %v526_v28 = vadd.f32 %v525_v2, %v3446_v20  ;;  %v462_v33 = vadd.f32 %v3458_v63, %v3456_v29  ;;  %v3476_v54 = vunpack.c.l.bf16 %v297_v35  ;;  %2348 = vmatpush3.bf16.msra.mxu0 %v2623_v50 }
  0xb5   : > { %4898 = vst [vmem:[#allocation76_spill] sm:$0xff] %v3465_v37  ;;  %4899 = vst [vmem:[#allocation77_spill] sm:$0xff] %v3468_v9  ;;  %v521_v48 = vadd.f32 %v520_v44, %v3441_v24  ;;  %v3478_v40 = vunpack.c.h.bf16 %v297_v35  ;;  %v3480_v32 = vunpack.c.l.bf16 %v298_v61  ;;  %v3483_v52 = vunpack.c.l.bf16 %v296_v0  ;;  %2537 = vmatprep.subr.bf16.mxu1 %v2624_v16  ;;  %2349 = vmatprep.subr.bf16.mxu0 %v2624_v16 }
  0xb6   : > { %4900 = vst [vmem:[#allocation78_spill] sm:$0xff] %v3471_v31  ;;  %4901 = vst [vmem:[#allocation79_spill] sm:$0xff] %v3476_v54  ;;  %685 = vadd.xlane.f32.xlu1 %v684_v30  ;;  %v527_v12 = vadd.f32 %v526_v28, %v3452_v22  ;;  %v3485_v25 = vunpack.c.h.bf16 %v296_v0  ;;  %v463_v2 = vadd.f32 %v462_v33, %v3468_v9  ;;  %v3490_v34 = vunpack.c.h.bf16 %v298_v61 }
  0xb7   : > { %4902 = vst [vmem:[#allocation80_spill] sm:$0xff] %v3478_v40  ;;  %4903 = vst [vmem:[#allocation81_spill] sm:$0xff] %v3480_v32  ;;  %v522_v44 = vadd.f32 %v521_v48, %v3449_v59  ;;  %v469_v35 = vadd.f32 %v3478_v40, %v3476_v54  ;;  %v633_v50 = vmul.f32 %v3421_v49, %v3421_v49  ;;  %v3502_v61 = vunpack.c.l.bf16 %v299_v45  ;;  %v2626_v49 = vld [vmem:[#allocation6 + $0x68] sm:$0xff]  }
  0xb8   : > { %4904 = vst [vmem:[#allocation82_spill] sm:$0xff] %v3483_v52  ;;  %4905 = vst [vmem:[#allocation83_spill] sm:$0xff] %v3485_v25  ;;  %v528_v30 = vadd.f32 %v527_v12, %v3463_v42  ;;  %v464_v0 = vadd.f32 %v463_v2, %v3471_v31  ;;  %v634_v28 = vmul.f32 %v3425_v60, %v3425_v60  ;;  %2545 = vmatpush3.bf16.msra.mxu1 %v2625_v57 }
  0xb9   : > { %4906 = vst [vmem:[#allocation84_spill] sm:$0xff] %v3490_v34  ;;  %v635_v33 = vmul.f32 %v3427_v21, %v3427_v21  ;;  %523 = vadd.xlane.f32.xlu0 %v522_v44  ;;  %4907 = vst [vmem:[#allocation85_spill] sm:$0xff] %v3502_v61  ;;  %v470_v48 = vadd.f32 %v469_v35, %v3480_v32  ;;  %v636_v7 = vmul.f32 %v3434_v36, %v3434_v36 }
  0xba   : > { %v529_v12 = vadd.f32 %v528_v30, %v3465_v37  ;;  %v465_v2 = vadd.f32 %v464_v0, %v3483_v52  ;;  %v743_v39 = vadd.f32 %v634_v28, %v633_v50  ;;  %v639_v60 = vmul.f32 %v3438_v55, %v3438_v55  ;;  %v2627_v28 = vld [vmem:[#allocation6 + $0x28] sm:$0xff]   ;;  %2538 = vmatprep.subr.bf16.mxu1 %v2626_v49 }
  0xbb   : > { %v3511_v21 = vunpack.c.h.bf16 %v299_v45  ;;  %v471_v44 = vadd.f32 %v470_v48, %v3490_v34  ;;  %v640_v35 = vmul.f32 %v3444_v14, %v3444_v14  ;;  %v641_v36 = vmul.f32 %v3446_v20, %v3446_v20  ;;  %2350 = vmatpush3.bf16.msra.mxu0 %v2625_v57 }
  0xbc   : > { %530 = vadd.xlane.f32.xlu1 %v529_v12  ;;  %v466_v30 = vadd.f32 %v465_v2, %v3485_v25  ;;  %v637_v50 = vmul.f32 %v3441_v24, %v3441_v24  ;;  %v744_v0 = vadd.f32 %v743_v39, %v635_v33  ;;  %v642_v45 = vmul.f32 %v3452_v22, %v3452_v22 }
  0xbd   : > { %4908 = vst [vmem:[#allocation86_spill] sm:$0xff] %v3511_v21  ;;  %v472_v48 = vadd.f32 %v471_v44, %v3502_v61  ;;  %v750_v55 = vadd.f32 %v640_v35, %v639_v60  ;;  %v585_v14 = vmul.f32 %v3456_v29, %v3456_v29  ;;  %v586_v16 = vmul.f32 %v3458_v63, %v3458_v63  ;;  %v2628_v44 = vld [vmem:[#allocation6 + $0x70] sm:$0xff]  }
  0xbe   : > { %467 = vadd.xlane.f32.xlu0 %v466_v30  ;;  %v638_v12 = vmul.f32 %v3449_v59, %v3449_v59  ;;  %v745_v2 = vadd.f32 %v744_v0, %v636_v7  ;;  %v643_v39 = vmul.f32 %v3463_v42, %v3463_v42  ;;  %v587_v33 = vmul.f32 %v3468_v9, %v3468_v9  ;;  %v2629_v42 = vld [vmem:[#allocation6 + $0x30] sm:$0xff]  }
  0xbf   : > { %v473_v60 = vadd.f32 %v472_v48, %v3511_v21  ;;  %v751_v35 = vadd.f32 %v750_v55, %v641_v36  ;;  %v588_v24 = vmul.f32 %v3471_v31, %v3471_v31  ;;  %v687_v20 = vadd.f32 %v586_v16, %v585_v14  ;;  %2546 = vmatpush3.bf16.msra.mxu1 %v2627_v28 }
  0xc0   : > { %v746_v30 = vadd.f32 %v745_v2, %v637_v50  ;;  %v591_v59 = vmul.f32 %v3476_v54, %v3476_v54  ;;  %v592_v7 = vmul.f32 %v3478_v40, %v3478_v40  ;;  %v593_v0 = vmul.f32 %v3480_v32, %v3480_v32  ;;  %2351 = vmatprep.subr.bf16.mxu0 %v2626_v49  ;;  %v2631_v49 = vld [vmem:[#allocation6 + $0x38] sm:$0xff]  }
  0xc1   : > { %474 = vadd.xlane.f32.xlu1 %v473_v60  ;;  %v644_v36 = vmul.f32 %v3465_v37, %v3465_v37  ;;  %v752_v55 = vadd.f32 %v751_v35, %v642_v45  ;;  %v589_v57 = vmul.f32 %v3483_v52, %v3483_v52  ;;  %v688_v14 = vadd.f32 %v687_v20, %v587_v33  ;;  %v2630_v20 = vld [vmem:[#allocation6 + $0x78] sm:$0xff]  }
  0xc2   : > { %v747_v50 = vadd.f32 %v746_v30, %v638_v12  ;;  %v594_v48 = vmul.f32 %v3490_v34, %v3490_v34  ;;  %v694_v16 = vadd.f32 %v592_v7, %v591_v59  ;;  %2539 = vmatprep.subr.bf16.mxu1 %v2628_v44  ;;  %v1047_v2 = vlaneseq  ;;  %2352 = vmatpush3.bf16.msra.mxu0 %v2627_v28  ;;  %v1045_v28 = vld [vmem:[%s4667_s1] sm:$0x3f] }
  0xc3   : > { %v753_v22 = vadd.f32 %v752_v55, %v643_v39  ;;  %v590_v60 = vmul.f32 %v3485_v25, %v3485_v25  ;;  %v689_v32 = vadd.f32 %v688_v14, %v588_v24  ;;  %v595_v45 = vmul.f32 %v3502_v61, %v3502_v61  ;;  %2547 = vmatpush3.bf16.msra.mxu1 %v2629_v42  ;;  %v2632_v55 = vld [vmem:[#allocation6 + $0xc0] sm:$0xff]  }
  0xc4   : > { %748 = vadd.xlane.f32.xlu0 %v747_v50  ;;  %v695_v35 = vadd.f32 %v694_v16, %v593_v0  ;;  %v1048_v12 = vshrl.u32 %v1047_v2, 7  ;;  %2353 = vmatprep.subr.bf16.mxu0 %v2628_v44  ;;  %v596_v59 = vmul.f32 %v3511_v21, %v3511_v21  ;;  %v2634_v14 = vld [vmem:[#allocation6 + $0x140] sm:$0xff]  }
  0xc5   : > { %v754_v33 = vadd.f32 %v753_v22, %v644_v36  ;;  %v690_v30 = vadd.f32 %v689_v32, %v589_v57  ;;  %2540 = vmatprep.subr.bf16.mxu1 %v2630_v20  ;;  %v1173_v32 = vld [vmem:[#allocation4] sm:$0x3f] }
  0xc6   : > { %v696_v39 = vadd.f32 %v695_v35, %v594_v48  ;;  %2354 = vmatpush3.bf16.msra.mxu0 %v2629_v42  ;;  %v1057_v7 = vsub.s32 2, %v1048_v12  ;;  %v1065_v57 = vsub.s32 4, %v1048_v12 }
  0xc7   : > { %755 = vadd.xlane.f32.xlu1 %v754_v33  ;;  %v691_v24 = vadd.f32 %v690_v30, %v590_v60  ;;  %2548 = vmatpush3.bf16.msra.mxu1 %v2631_v49  ;;  %v1049_v33 = vsub.s32 0, %v1048_v12  ;;  %v1061_v30 = vsub.s32 3, %v1048_v12 }
  0xc8   : > { %v697_v0 = vadd.f32 %v696_v39, %v595_v45  ;;  %2355 = vmatprep.subr.bf16.mxu0 %v2630_v20  ;;  %v3558_v44 = vrot.slane %v1045_v28, %v1057_v7  ;;  %v3560_v36 = vrot.slane %v1173_v32, %v1057_v7  ;;  %2405 = vmatprep.subr.bf16.mxu1 %v2632_v55  ;;  %v1053_v20 = vsub.s32 1, %v1048_v12 }
  0xc9   : > { %692 = vadd.xlane.f32.xlu0 %v691_v24  ;;  %v3562_v42 = vrot.slane %v1045_v28, %v1065_v57  ;;  %v3564_v50 = vrot.slane %v1173_v32, %v1065_v57  ;;  %v3578_v55 = vrot.slane %v1173_v32, %v1049_v33  ;;  %v3584_v37 = vrot.slane %v1173_v32, %v1061_v30 }
  0xca   : > { %v698_v22 = vadd.f32 %v697_v0, %v596_v59  ;;  %2356 = vmatpush3.bf16.msra.mxu0 %v2631_v49  ;;  %v1069_v49 = vsub.s32 5, %v1048_v12  ;;  %v3572_v7 = vrot.slane %v1045_v28, %v1053_v20  ;;  %v3574_v0 = vrot.slane %v1173_v32, %v1053_v20 }
  0xcb   : > { %4909 = vst [vmem:[#allocation87_spill] sm:$0xff] %v3562_v42  ;;  %4910 = vst [vmem:[#allocation88_spill] sm:$0xff] %v3564_v50  ;;  %2469 = vmatprep.subr.bf16.mxu0 %v2634_v14  ;;  %v3582_v14 = vrot.slane %v1045_v28, %v1061_v30 }
  0xcc   : > { %699 = vadd.xlane.f32.xlu1 %v698_v22  ;;  %v3576_v22 = vrot.slane %v1045_v28, %v1049_v33  ;;  %v3586_v12 = vrot.slane %v1045_v28, %v1069_v49  ;;  %v4913_v33 = vld [vmem:[#allocation12_spill] sm:$0xff] }
 0x105   : > { %v482_v48 = vpop.xlane.xlu0 %481 }
 0x106   : > { %v426_v16 = vpop.xlane.xlu1 %425  ;;  %v3566_v59 = vmul.f32 0.0013020834, %v482_v48  ;;  %v3588_v48 = vrot.slane %v1173_v32, %v1069_v49 }
 0x107   : > { %v3570_v24 = vmul.f32 0.0013020834, %v426_v16 }
 0x108   : > { %4911 = vst [vmem:[#allocation89_spill] sm:$0xff] %v3566_v59  ;;  %v781_v20 = vmul.f32 %v3566_v59, %v3566_v59  ;;  %v4936_v58 = vsub.f32 %v3030_v3, %v3566_v59 }
 0x109   : > { %v489_v2 = vpop.xlane.xlu0 %488  ;;  %v773_v52 = vmul.f32 %v3570_v24, %v3570_v24 }
 0x10a   : > { %v433_v60 = vpop.xlane.xlu1 %432  ;;  %v3590_v16 = vmul.f32 0.0013020834, %v489_v2 }
 0x10b   : > { %v3606_v30 = vmul.f32 0.0013020834, %v433_v60 }
 0x10c   : > { %4912 = vst [vmem:[#allocation90_spill] sm:$0xff] %v3590_v16  ;;  %v782_v2 = vmul.f32 %v3590_v16, %v3590_v16 }
 0x10d   : > { %v496_v45 = vpop.xlane.xlu0 %495  ;;  %v774_v61 = vmul.f32 %v3606_v30, %v3606_v30 }
 0x10e   : > { %v3628_v34 = vmul.f32 0.0013020834, %v496_v45 }
 0x110   : > { %4915 = vst [vmem:[#allocation12_spill] sm:$0xff] %v3628_v34  ;;  %v4954_v3 = vsub.f32 %v3101_v47, %v3628_v34 }
 0x111   : > { %v503_v35 = vpop.xlane.xlu1 %502 }
 0x112   : > { %v3650_v21 = vmul.f32 0.0013020834, %v503_v35  ;;  %v4935_v35 = vsub.f32 %v3032_v4, %v3566_v59 }
 0x113   : > { %v3568_v39 = vpop.xlane.xlu0 %439 }
 0x116   : > { %v3580_v57 = vpop.xlane.xlu1 %446 }
 0x119   : > { %v707_v49 = vpop.xlane.xlu0 %706 }
 0x11a   : > { %v765_v9 = vmul.f32 0.0013020834, %v707_v49 }
 0x11c   : > { %v797_v28 = vsub.f32 %v765_v9, %v781_v20  ;;  %v714_v31 = vpop.xlane.xlu1 %713  ;;  %v4919_v9 = vld [vmem:[#allocation18_spill] sm:$0xff]  ;;  %v783_v20 = vmul.f32 %v3628_v34, %v3628_v34 }
 0x11d   : > { %v766_v5 = vmul.f32 0.0013020834, %v714_v31  ;;  %4921 = vst [vmem:[#allocation18_spill] sm:$0xff] %v3650_v21 }
 0x11e   : > { %v813_v45 = vmax.f32 %v797_v28, 0.0 }
 0x11f   : > { %v651_v49 = vpop.xlane.xlu0 %650  ;;  %v798_v60 = vsub.f32 %v766_v5, %v782_v2  ;;  %v3684_v5 = vmul.f32 0.0013020834, %v3580_v57  ;;  %v4926_v2 = vld [vmem:[#allocation27_spill] sm:$0xff] }
 0x120   : > { %v757_v41 = vmul.f32 0.0013020834, %v651_v49  ;;  %v829_v28 = vadd.f32 1e-05, %v813_v45 }
 0x121   : > { %v814_v50 = vmax.f32 %v798_v60, 0.0  ;;  %v658_v31 = vpop.xlane.xlu1 %657  ;;  %v3669_v60 = vmul.f32 0.0013020834, %v3568_v39 }
 0x122   : > { %v789_v54 = vsub.f32 %v757_v41, %v773_v52  ;;  %2664 = vrsqrt.f32 %v829_v28  ;;  %v758_v49 = vmul.f32 0.0013020834, %v658_v31  ;;  %v784_v31 = vmul.f32 %v3650_v21, %v3650_v21 }
 0x123   : > { %v830_v25 = vadd.f32 1e-05, %v814_v50  ;;  %v775_v52 = vmul.f32 %v3669_v60, %v3669_v60 }
 0x124   : > { %v805_v42 = vmax.f32 %v789_v54, 0.0  ;;  %v790_v32 = vsub.f32 %v758_v49, %v774_v61  ;;  %v721_v28 = vpop.xlane.xlu0 %720  ;;  %v4930_v61 = vld [vmem:[#allocation34_spill] sm:$0xff] }
 0x125   : > { %2666 = vrsqrt.f32 %v830_v25  ;;  %v767_v54 = vmul.f32 0.0013020834, %v721_v28 }
 0x126   : > { %v821_v50 = vadd.f32 1e-05, %v805_v42  ;;  %v806_v45 = vmax.f32 %v790_v32, 0.0 }
 0x127   : > { %v799_v25 = vsub.f32 %v767_v54, %v783_v20  ;;  %v728_v42 = vpop.xlane.xlu1 %727 }
 0x128   : > { %2668 = vrsqrt.f32 %v821_v50  ;;  %v822_v41 = vadd.f32 1e-05, %v806_v45  ;;  %v768_v32 = vmul.f32 0.0013020834, %v728_v42  ;;  %v4927_v50 = vld [vmem:[#allocation32_spill] sm:$0xff] }
 0x129   : > { %v815_v53 = vmax.f32 %v799_v25, 0.0  ;;  %v776_v25 = vmul.f32 %v3684_v5, %v3684_v5 }
 0x12a   : > { %v665_v39 = vpop.xlane.xlu0 %664  ;;  %2670 = vrsqrt.f32 %v822_v41  ;;  %v800_v45 = vsub.f32 %v768_v32, %v784_v31  ;;  %v4933_v31 = vld [vmem:[#allocation33_spill] sm:$0xff] }
 0x12b   : > { %v759_v42 = vmul.f32 0.0013020834, %v665_v39  ;;  %v831_v13 = vadd.f32 1e-05, %v815_v53 }
 0x12c   : > { %v3706_v20 = vpop.eup %2664  ;;  %v816_v51 = vmax.f32 %v800_v45, 0.0  ;;  %v672_v41 = vpop.xlane.xlu1 %671 }
 0x12d   : > { %4932 = vst [vmem:[#allocation16_spill] sm:$0xff] %v3706_v20  ;;  %v791_v49 = vsub.f32 %v759_v42, %v775_v52  ;;  %2672 = vrsqrt.f32 %v831_v13  ;;  %v760_v28 = vmul.f32 0.0013020834, %v672_v41  ;;  %v998_v18 = vmul.f32 %v3706_v20, %v4935_v35 }
 0x12e   : > { %v997_v45 = vmul.f32 %v3706_v20, %v4936_v58  ;;  %v832_v52 = vadd.f32 1e-05, %v816_v51 }
 0x12f   : > { %v807_v42 = vmax.f32 %v791_v49, 0.0  ;;  %v3724_v13 = vpop.eup %2666  ;;  %v792_v41 = vsub.f32 %v760_v28, %v776_v25  ;;  %v510_v26 = vpop.xlane.xlu0 %509  ;;  %v1126_v4 = vmul.f32 %v3572_v7, %v998_v18  ;;  %v4942_v49 = vsub.f32 %v3063_v23, %v3590_v16 }
 0x130   : > { %4939 = vst [vmem:[#allocation28_spill] sm:$0xff] %v3724_v13  ;;  %v1125_v35 = vmul.f32 %v3576_v22, %v997_v45  ;;  %2674 = vrsqrt.f32 %v832_v52  ;;  %v3730_v58 = vmul.f32 0.0013020834, %v510_v26  ;;  %v4943_v18 = vsub.f32 %v4913_v33, %v3590_v16 }
 0x131   : > { %v823_v51 = vadd.f32 1e-05, %v807_v42  ;;  %v1004_v53 = vmul.f32 %v3724_v13, %v4942_v49  ;;  %v808_v28 = vmax.f32 %v792_v41, 0.0  ;;  %v1254_v25 = vadd.f32 %v3574_v0, %v1126_v4 }
 0x132   : > { %4941 = vst [vmem:[#allocation27_spill] sm:$0xff] %v3730_v58  ;;  %v3736_v39 = vpop.eup %2668  ;;  %v1003_v45 = vmul.f32 %v3724_v13, %v4943_v18  ;;  %v4944_v52 = vsub.f32 %v3038_v8, %v3566_v59  ;;  %v517_v23 = vpop.xlane.xlu1 %516  ;;  %v1253_v49 = vadd.f32 %v3578_v55, %v1125_v35  ;;  %v4946_v41 = vsub.f32 %v3043_v11, %v3570_v24 }
 0x133   : > { %2676 = vrsqrt.f32 %v823_v51  ;;  %v1132_v42 = vmul.f32 %v3572_v7, %v1004_v53  ;;  %v824_v33 = vadd.f32 1e-05, %v808_v28  ;;  %v3755_v32 = vmul.f32 0.0013020834, %v517_v23  ;;  %v4949_v23 = vld [vmem:[#allocation42_spill] sm:$0xff] }
 0x134   : > { %v3747_v26 = vmul.f32 %v3706_v20, %v4944_v52  ;;  %v950_v4 = vmul.f32 %v3736_v39, %v4946_v41  ;;  %v1131_v18 = vmul.f32 %v3576_v22, %v1003_v45  ;;  %v4948_v8 = vsub.f32 %v3041_v10, %v3570_v24  ;;  %v3762_v52 = vpop.eup %2670  ;;  %v2633_v41 = vld [vmem:[#allocation6 + $0x80] sm:$0xff]  }
 0x135   : > { %4947 = vst [vmem:[#allocation34_spill] sm:$0xff] %v3755_v32  ;;  %v454_v53 = vpop.xlane.xlu0 %453  ;;  %v3766_v35 = vmul.f32 %v3730_v58, %v3730_v58  ;;  %v1260_v11 = vadd.f32 %v3574_v0, %v1132_v42  ;;  %2678 = vrsqrt.f32 %v824_v33  ;;  %v3779_v13 = vmul.f32 %v3755_v32, %v3755_v32 }
 0x136   : > { %4945 = vst [vmem:[#allocation32_spill] sm:$0xff] %v3747_v26  ;;  %v949_v51 = vmul.f32 %v3736_v39, %v4948_v8  ;;  %v1078_v28 = vmul.f32 %v3572_v7, %v950_v4  ;;  %v3772_v45 = vmul.f32 0.0013020834, %v454_v53  ;;  %v1259_v10 = vadd.f32 %v3578_v55, %v1131_v18  ;;  %v4950_v8 = vld [vmem:[#allocation41_spill] sm:$0xff] }
 0x137   : > { %v1326_v16 = vpack.c.bf16 %v1260_v11, %v1254_v25  ;;  %v4951_v42 = vsub.f32 %v4919_v9, %v3606_v30  ;;  %v4952_v33 = vsub.f32 %v4920_v15, %v3606_v30  ;;  %v3789_v18 = vpop.eup %2672  ;;  %v2635_v11 = vld [vmem:[#allocation6 + $0xc8] sm:$0xff]  }
 0x138   : > { %4953 = vst [vmem:[#allocation33_spill] sm:$0xff] %v3789_v18  ;;  %v461_v20 = vpop.xlane.xlu1 %460  ;;  %v3793_v26 = vmul.f32 %v3772_v45, %v3772_v45  ;;  %v1325_v59 = vpack.c.bf16 %v1259_v10, %v1253_v49  ;;  %v1206_v25 = vadd.f32 %v3574_v0, %v1078_v28  ;;  %v1077_v9 = vmul.f32 %v3576_v22, %v949_v51 }
 0x139   : > { %v956_v4 = vmul.f32 %v3762_v52, %v4951_v42  ;;  %v955_v53 = vmul.f32 %v3762_v52, %v4952_v33  ;;  %v3797_v42 = vmul.f32 0.0013020834, %v461_v20  ;;  %1804 = vmatprep.mubr.bf16.mxu1 %v1326_v16  ;;  %v1010_v54 = vmul.f32 %v3789_v18, %v4954_v3  ;;  %v4956_v20 = vld [vmem:[#allocation47_spill] sm:$0xff] }
 0x13a   : > { %1805 = vmatmul.mubr.bf16.vlgmr.msra.gmra.mrb[0].mxu1 %v1325_v59  ;;  %v1205_v49 = vadd.f32 %v3578_v55, %v1077_v9  ;;  %v4955_v28 = vsub.f32 %v3099_v46, %v3628_v34  ;;  %v2637_v9 = vld [vmem:[#allocation6 + $0x88] sm:$0xff]   ;;  %v4960_v16 = vsub.f32 %v3129_v6, %v3650_v21  ;;  %v4961_v34 = vsub.f32 %v3122_v62, %v3650_v21 }
 0x13b   : > { %v1084_v15 = vmul.f32 %v3572_v7, %v956_v4  ;;  %v1083_v33 = vmul.f32 %v3576_v22, %v955_v53  ;;  %v3814_v53 = vpop.eup %2674  ;;  %v735_v57 = vpop.xlane.xlu0 %734  ;;  %v1138_v3 = vmul.f32 %v3572_v7, %v1010_v54  ;;  %2406 = vmatpush3.bf16.msra.mxu1 %v2633_v41  ;;  %v2639_v54 = vld [vmem:[#allocation6 + $0xd0] sm:$0xff]   ;;  %v4962_v10 = vsub.f32 %v4925_v1, %v3669_v60 }
 0x13c   : > { %v1009_v51 = vmul.f32 %v3789_v18, %v4955_v28  ;;  %4958 = vst [vmem:[#allocation42_spill] sm:$0xff] %v3814_v53  ;;  %v769_v18 = vmul.f32 0.0013020834, %v735_v57  ;;  %v1016_v4 = vmul.f32 %v3814_v53, %v4960_v16  ;;  %2407 = vmatprep.subr.bf16.mxu1 %v2635_v11  ;;  %v3834_v28 = vmul.f32 %v3797_v42, %v3797_v42  ;;  %v2636_v16 = vld [vmem:[#allocation6 + $0x100] sm:$0xff]  }
 0x13d   : > { %v1212_v47 = vadd.f32 %v3574_v0, %v1084_v15  ;;  %v1211_v59 = vadd.f32 %v3578_v55, %v1083_v33  ;;  %v1015_v15 = vmul.f32 %v3814_v53, %v4961_v34  ;;  %v3830_v41 = vpop.eup %2676  ;;  %v1266_v6 = vadd.f32 %v3574_v0, %v1138_v3  ;;  %v2638_v53 = vld [vmem:[#allocation6 + $0x148] sm:$0xff]  }
 0x13e   : > { %v1137_v33 = vmul.f32 %v3576_v22, %v1009_v51  ;;  %v801_v40 = vsub.f32 %v769_v18, %v3766_v35  ;;  %v742_v62 = vpop.xlane.xlu1 %741  ;;  %v1144_v34 = vmul.f32 %v3572_v7, %v1016_v4  ;;  %v2641_v18 = vld [vmem:[#allocation6 + $0x90] sm:$0xff]  }
 0x13f   : > { %v1302_v57 = vpack.c.bf16 %v1212_v47, %v1206_v25  ;;  %v1301_v46 = vpack.c.bf16 %v1211_v59, %v1205_v49  ;;  %v1143_v51 = vmul.f32 %v3576_v22, %v1015_v15  ;;  %v770_v21 = vmul.f32 0.0013020834, %v742_v62  ;;  %2408 = vmatpush3.bf16.msra.mxu1 %v2637_v9  ;;  %v3851_v59 = vpop.eup %2678 }
 0x140   : > { %v1265_v11 = vadd.f32 %v3578_v55, %v1137_v33  ;;  %v962_v25 = vmul.f32 %v3830_v41, %v4962_v10  ;;  %v4963_v49 = vsub.f32 %v4926_v2, %v3669_v60  ;;  %v817_v3 = vmax.f32 %v801_v40, 0.0  ;;  %v679_v15 = vpop.xlane.xlu0 %678  ;;  %2409 = vmatprep.subr.bf16.mxu1 %v2639_v54  ;;  %v4965_v10 = vld [vmem:[#allocation51_spill] sm:$0xff] }
 0x141   : > { %1772 = vmatprep.mubr.bf16.mxu0 %v1302_v57  ;;  %v1272_v33 = vadd.f32 %v3574_v0, %v1144_v34  ;;  %v1271_v1 = vadd.f32 %v3578_v55, %v1143_v51  ;;  %v2643_v57 = vld [vmem:[#allocation6 + $0xd8] sm:$0xff]   ;;  %v802_v9 = vsub.f32 %v770_v21, %v3779_v13  ;;  %v761_v62 = vmul.f32 0.0013020834, %v679_v15  ;;  %v2642_v21 = vld [vmem:[#allocation6 + $0x150] sm:$0xff]  }
 0x142   : > { %v961_v35 = vmul.f32 %v3830_v41, %v4963_v49  ;;  %1773 = vmatmul.mubr.bf16.vlgmr.msra.gmra.mrb[0].mxu0 %v1301_v46  ;;  %v4966_v49 = vsub.f32 %v4930_v61, %v3684_v5  ;;  %v1090_v40 = vmul.f32 %v3572_v7, %v962_v25  ;;  %v2640_v46 = vld [vmem:[#allocation6 + $0x108] sm:$0xff]   ;;  %v833_v34 = vadd.f32 1e-05, %v817_v3 }
 0x143   : > { %2470 = vmatpush3.bf16.msra.mxu0 %v2636_v16  ;;  %v1332_v4 = vpack.c.bf16 %v1272_v33, %v1266_v6  ;;  %v1331_v51 = vpack.c.bf16 %v1271_v1, %v1265_v11  ;;  %v4967_v54 = vsub.f32 %v4933_v31, %v3684_v5  ;;  %v818_v13 = vmax.f32 %v802_v9, 0.0  ;;  %v686_v61 = vpop.xlane.xlu1 %685  ;;  %2410 = vmatpush3.bf16.msra.mxu1 %v2641_v18  ;;  %v2645_v16 = vld [vmem:[#allocation6 + $0x98] sm:$0xff]  }
 0x144   : > { %v968_v47 = vmul.f32 %v3851_v59, %v4966_v49  ;;  %2471 = vmatprep.subr.bf16.mxu0 %v2638_v53  ;;  %v793_v15 = vsub.f32 %v761_v62, %v3793_v26  ;;  %v1218_v25 = vadd.f32 %v3574_v0, %v1090_v40  ;;  %2680 = vrsqrt.f32 %v833_v34  ;;  %2411 = vmatprep.subr.bf16.mxu1 %v2643_v57  ;;  %v2647_v53 = vld [vmem:[#allocation6 + $0xe0] sm:$0xff]   ;;  %v2646_v57 = vld [vmem:[#allocation6 + $0x158] sm:$0xff]  }
 0x145   : > { %v967_v2 = vmul.f32 %v3851_v59, %v4967_v54  ;;  %v762_v6 = vmul.f32 0.0013020834, %v686_v61  ;;  %1812 = vmatprep.mubr.bf16.mxu1 %v1332_v4  ;;  %v1089_v11 = vmul.f32 %v3576_v22, %v961_v35  ;;  %v834_v3 = vadd.f32 1e-05, %v818_v13  ;;  %v2651_v13 = vld [vmem:[#allocation6 + $0xe8] sm:$0xff]  }
 0x146   : > { %v1096_v49 = vmul.f32 %v3572_v7, %v968_v47  ;;  %v809_v33 = vmax.f32 %v793_v15, 0.0  ;;  %1813 = vmatmul.mubr.bf16.gmra.mrb[4].mxu1 %v1331_v51  ;;  %v2644_v47 = vld [vmem:[#allocation6 + $0x110] sm:$0xff]   ;;  %v4968_v18 = vsub.f32 %v3056_v19, %v3570_v24  ;;  %v524_v9 = vpop.xlane.xlu0 %523  ;;  %v4969_v62 = vsub.f32 %v3094_v43, %v3606_v30  ;;  %v2649_v51 = vld [vmem:[#allocation6 + $0xa0] sm:$0xff]  }
 0x147   : > { %v1095_v31 = vmul.f32 %v3576_v22, %v967_v2  ;;  %2472 = vmatpush3.bf16.msra.mxu0 %v2640_v46  ;;  %v794_v4 = vsub.f32 %v762_v6, %v3834_v28  ;;  %v1217_v35 = vadd.f32 %v3578_v55, %v1089_v11  ;;  %2682 = vrsqrt.f32 %v834_v3  ;;  %2412 = vmatpush3.bf16.msra.mxu1 %v2645_v16  ;;  %v2648_v16 = vld [vmem:[#allocation6 + $0x118] sm:$0xff]   ;;  %v4971_v6 = vld [vmem:[#allocation66_spill] sm:$0xff]  ;;  %v2650_v3 = vld [vmem:[#allocation6 + $0x160] sm:$0xff]  }
 0x148   : > { %v1224_v26 = vadd.f32 %v3574_v0, %v1096_v49  ;;  %v952_v1 = vmul.f32 %v3736_v39, %v4968_v18  ;;  %2473 = vmatprep.subr.bf16.mxu0 %v2642_v21  ;;  %v958_v40 = vmul.f32 %v3762_v52, %v4969_v62  ;;  %v825_v46 = vadd.f32 1e-05, %v809_v33  ;;  %2413 = vmatprep.subr.bf16.mxu1 %v2647_v53  ;;  %v4970_v49 = vld [vmem:[#allocation57_spill] sm:$0xff] }
 0x149   : > { %v1223_v2 = vadd.f32 %v3578_v55, %v1095_v31  ;;  %v3884_v34 = vmul.f32 0.0013020834, %v524_v9  ;;  %v810_v28 = vmax.f32 %v794_v4, 0.0  ;;  %v531_v61 = vpop.xlane.xlu1 %530  ;;  %v4974_v9 = vsub.f32 %v3113_v56, %v3606_v30  ;;  %v4977_v56 = vld [vmem:[#allocation65_spill] sm:$0xff] }
 0x14a   : > { %v1308_v19 = vpack.c.bf16 %v1224_v26, %v1218_v25  ;;  %v1080_v15 = vmul.f32 %v3582_v14, %v952_v1  ;;  %v1086_v21 = vmul.f32 %v3582_v14, %v958_v40  ;;  %2684 = vrsqrt.f32 %v825_v46  ;;  %v2653_v1 = vld [vmem:[#allocation6 + $0xa8] sm:$0xff]   ;;  %v4989_v25 = vld [vmem:[#allocation45_spill] sm:$0xff] }
 0x14b   : > { %v1307_v54 = vpack.c.bf16 %v1223_v2, %v1217_v35  ;;  %v3890_v43 = vmul.f32 %v3884_v34, %v3884_v34  ;;  %2474 = vmatpush3.bf16.msra.mxu0 %v2644_v47  ;;  %v826_v31 = vadd.f32 1e-05, %v810_v28  ;;  %v3896_v53 = vmul.f32 0.0013020834, %v531_v61  ;;  %v468_v18 = vpop.xlane.xlu0 %467  ;;  %2414 = vmatpush3.bf16.msra.mxu1 %v2649_v51  ;;  %v2655_v51 = vld [vmem:[#allocation6 + $0xf0] sm:$0xff]  }
 0x14c   : > { %1780 = vmatprep.mubr.bf16.mxu0 %v1308_v19  ;;  %2475 = vmatprep.subr.bf16.mxu0 %v2646_v57  ;;  %v3899_v33 = vadd.f32 %v3584_v37, %v1080_v15  ;;  %v3902_v26 = vadd.f32 %v3584_v37, %v1086_v21  ;;  %v4973_v47 = vsub.f32 %v3069_v27, %v3570_v24  ;;  %v3920_v46 = vmul.f32 0.0013020834, %v468_v18  ;;  %v4978_v28 = vld [vmem:[#allocation71_spill] sm:$0xff]  ;;  %v4980_v18 = vld [vmem:[#allocation69_spill] sm:$0xff] }
 0x14d   : > { %1781 = vmatmul.mubr.bf16.gmra.mrb[4].mxu0 %v1307_v54  ;;  %v960_v35 = vmul.f32 %v3762_v52, %v4974_v9  ;;  %v4975_v2 = vsub.f32 %v3053_v17, %v3570_v24  ;;  %v4976_v62 = vsub.f32 %v3087_v38, %v3606_v30  ;;  %2686 = vrsqrt.f32 %v826_v31  ;;  %2415 = vmatprep.subr.bf16.mxu1 %v2651_v13  ;;  %v2652_v17 = vld [vmem:[#allocation6 + $0x120] sm:$0xff]   ;;  %v2657_v54 = vld [vmem:[#allocation6 + $0xb0] sm:$0xff]  }
 0x14e   : > { %4972 = vst [vmem:[#allocation41_spill] sm:$0xff] %v3899_v33  ;;  %v954_v4 = vmul.f32 %v3736_v39, %v4973_v47  ;;  %v3924_v27 = vmul.f32 %v3896_v53, %v3896_v53  ;;  %v3934_v61 = vpop.eup %2680  ;;  %v475_v31 = vpop.xlane.xlu1 %474  ;;  %v3938_v13 = vmul.f32 %v3920_v46, %v3920_v46  ;;  %v4982_v38 = vsub.f32 %v4950_v8, %v3730_v58 }
 0x14f   : > { %v951_v57 = vmul.f32 %v3736_v39, %v4975_v2  ;;  %v957_v40 = vmul.f32 %v3762_v52, %v4976_v62  ;;  %2476 = vmatpush3.bf16.msra.mxu0 %v2648_v16  ;;  %v1088_v21 = vmul.f32 %v3586_v12, %v960_v35  ;;  %4979 = vst [vmem:[#allocation47_spill] sm:$0xff] %v3934_v61  ;;  %v2654_v16 = vld [vmem:[#allocation6 + $0x168] sm:$0xff]  }
 0x150   : > { %v1082_v15 = vmul.f32 %v3586_v12, %v954_v4  ;;  %2477 = vmatprep.subr.bf16.mxu0 %v2650_v3  ;;  %v3945_v4 = vmul.f32 0.0013020834, %v475_v31  ;;  %v4981_v35 = vsub.f32 %v4949_v23, %v3730_v58  ;;  %v1021_v3 = vmul.f32 %v3934_v61, %v4982_v38  ;;  %2416 = vmatpush3.bf16.msra.mxu1 %v2653_v1  ;;  %v2659_v31 = vld [vmem:[#allocation6 + $0xf8] sm:$0xff]   ;;  %v2658_v58 = vld [vmem:[#allocation6 + $0x170] sm:$0xff]  }
 0x151   : > { %v1079_v2 = vmul.f32 %v3558_v44, %v951_v57  ;;  %2417 = vmatprep.subr.bf16.mxu1 %v2655_v51  ;;  %v3961_v9 = vadd.f32 %v3588_v48, %v1088_v21  ;;  %v1085_v23 = vmul.f32 %v3558_v44, %v957_v40  ;;  %v3967_v8 = vpop.eup %2682  ;;  %v749_v1 = vpop.xlane.xlu0 %748  ;;  %v2656_v57 = vld [vmem:[#allocation6 + $0x128] sm:$0xff]   ;;  %v4987_v21 = vsub.f32 %v4927_v50, %v3669_v60 }
 0x152   : > { %v1022_v62 = vmul.f32 %v3934_v61, %v4981_v35  ;;  %v3956_v47 = vadd.f32 %v3588_v48, %v1082_v15  ;;  %4986 = vst [vmem:[#allocation65_spill] sm:$0xff] %v3967_v8  ;;  %v3971_v38 = vmul.f32 %v3945_v4, %v3945_v4  ;;  %v1149_v15 = vmul.f32 %v3576_v22, %v1021_v3 }
 0x153   : > { %4984 = vst [vmem:[#allocation57_spill] sm:$0xff] %v3961_v9  ;;  %v3965_v35 = vadd.f32 %v3560_v36, %v1079_v2  ;;  %2478 = vmatpush3.bf16.msra.mxu0 %v2652_v17  ;;  %v964_v40 = vmul.f32 %v3830_v41, %v4987_v21  ;;  %v771_v2 = vmul.f32 0.0013020834, %v749_v1  ;;  %v4988_v19 = vsub.f32 %v4956_v20, %v3755_v32  ;;  %v4991_v17 = vld [vmem:[#allocation80_spill] sm:$0xff] }
 0x154   : > { %4983 = vst [vmem:[#allocation51_spill] sm:$0xff] %v3956_v47  ;;  %v1150_v51 = vmul.f32 %v3572_v7, %v1022_v62  ;;  %v4990_v61 = vsub.f32 %v4989_v25, %v3755_v32  ;;  %2479 = vmatprep.subr.bf16.mxu0 %v2654_v16  ;;  %v3989_v33 = vpop.eup %2684  ;;  %v1277_v1 = vadd.f32 %v3578_v55, %v1149_v15  ;;  %v2661_v20 = vld [vmem:[#allocation6 + $0xb8] sm:$0xff]   ;;  %v756_v16 = vpop.xlane.xlu1 %755  ;;  %v2660_v32 = vld [vmem:[#allocation6 + $0x130] sm:$0xff]  }
 0x155   : > { %4985 = vst [vmem:[#allocation66_spill] sm:$0xff] %v3965_v35  ;;  %v1028_v11 = vmul.f32 %v3967_v8, %v4988_v19  ;;  %2418 = vmatpush3.bf16.msra.mxu1 %v2657_v54  ;;  %v3996_v25 = vadd.f32 %v3560_v36, %v1085_v23  ;;  %v772_v54 = vmul.f32 0.0013020834, %v756_v16  ;;  %v4995_v19 = vsub.f32 %v4965_v10, %v3772_v45  ;;  %v4998_v35 = vld [vmem:[#allocation58_spill] sm:$0xff] }
 0x156   : > { %v1027_v62 = vmul.f32 %v3967_v8, %v4990_v61  ;;  %v1278_v50 = vadd.f32 %v3574_v0, %v1150_v51  ;;  %v803_v61 = vsub.f32 %v771_v2, %v3890_v43  ;;  %v4993_v8 = vld [vmem:[#allocation52_spill] sm:$0xff]  ;;  %2419 = vmatprep.subr.bf16.mxu1 %v2659_v31  ;;  %v693_v31 = vpop.xlane.xlu0 %692 }
 0x157   : > { %4992 = vst [vmem:[#allocation71_spill] sm:$0xff] %v3996_v25  ;;  %v1156_v21 = vmul.f32 %v3572_v7, %v1028_v11  ;;  %v4994_v51 = vsub.f32 %v4993_v8, %v3772_v45  ;;  %v973_v23 = vmul.f32 %v3989_v33, %v4995_v19  ;;  %2480 = vmatpush3.bf16.msra.mxu0 %v2656_v57  ;;  %v4996_v11 = vld [vmem:[#allocation38_spill] sm:$0xff]  ;;  %v4015_v8 = vpop.eup %2686  ;;  %v2662_v57 = vld [vmem:[#allocation6 + $0x178] sm:$0xff]   ;;  %v763_v43 = vmul.f32 0.0013020834, %v693_v31 }
 0x158   : > { %v1155_v3 = vmul.f32 %v3576_v22, %v1027_v62  ;;  %v4997_v2 = vsub.f32 %v4996_v11, %v3684_v5  ;;  %2481 = vmatprep.subr.bf16.mxu0 %v2658_v58  ;;  %v804_v47 = vsub.f32 %v772_v54, %v3924_v27  ;;  %v4999_v11 = vsub.f32 %v4998_v35, %v3797_v42 }
 0x159   : > { %v974_v15 = vmul.f32 %v3989_v33, %v4994_v51  ;;  %v819_v51 = vmax.f32 %v803_v61, 0.0  ;;  %v1284_v16 = vadd.f32 %v3574_v0, %v1156_v21  ;;  %v5000_v61 = vsub.f32 %v4970_v49, %v3797_v42  ;;  %2420 = vmatpush3.bf16.msra.mxu1 %v2661_v20  ;;  %v700_v54 = vpop.xlane.xlu1 %699 }
 0x15a   : > { %v970_v62 = vmul.f32 %v3851_v59, %v4997_v2  ;;  %v1283_v10 = vadd.f32 %v3578_v55, %v1155_v3  ;;  %v980_v2 = vmul.f32 %v4015_v8, %v4999_v11  ;;  %v795_v27 = vsub.f32 %v763_v43, %v3938_v13  ;;  %v2663_v11 = vld [vmem:[#allocation6 + $0x138] sm:$0xff]  }
 0x15b   : > { %v1102_v19 = vmul.f32 %v3572_v7, %v974_v15  ;;  %v979_v25 = vmul.f32 %v4015_v8, %v5000_v61  ;;  %v835_v21 = vadd.f32 1e-05, %v819_v51  ;;  %v1338_v3 = vpack.c.bf16 %v1284_v16, %v1278_v50  ;;  %2482 = vmatpush3.bf16.msra.mxu0 %v2660_v32  ;;  %v5003_v61 = vld [vmem:[#allocation20_spill] sm:$0xff] }
 0x15c   : > { %v1337_v9 = vpack.c.bf16 %v1283_v10, %v1277_v1  ;;  %v820_v15 = vmax.f32 %v804_v47, 0.0  ;;  %v1108_v31 = vmul.f32 %v3572_v7, %v980_v2  ;;  %v1101_v35 = vmul.f32 %v3576_v22, %v973_v23  ;;  %2483 = vmatprep.subr.bf16.mxu0 %v2662_v57 }
 0x15d   : > { %v1230_v58 = vadd.f32 %v3574_v0, %v1102_v19  ;;  %2688 = vrsqrt.f32 %v835_v21  ;;  %v764_v49 = vmul.f32 0.0013020834, %v700_v54  ;;  %1820 = vmatprep.mubr.bf16.mxu1 %v1338_v3  ;;  %v1107_v20 = vmul.f32 %v3576_v22, %v979_v25  ;;  %v5005_v3 = vld [vmem:[#allocation87_spill] sm:$0xff] }
 0x15e   : > { %v1092_v50 = vmul.f32 %v3582_v14, %v964_v40  ;;  %v836_v1 = vadd.f32 1e-05, %v820_v15  ;;  %v811_v51 = vmax.f32 %v795_v27, 0.0  ;;  %1821 = vmatmul.mubr.bf16.gmra.mrb[8].mxu1 %v1337_v9  ;;  %v1236_v13 = vadd.f32 %v3574_v0, %v1108_v31  ;;  %v5001_v40 = vld [vmem:[#allocation13_spill] sm:$0xff] }
 0x15f   : > { %v1229_v47 = vadd.f32 %v3578_v55, %v1101_v35  ;;  %v796_v43 = vsub.f32 %v764_v49, %v3971_v38  ;;  %v1235_v32 = vadd.f32 %v3578_v55, %v1107_v20  ;;  %v1098_v23 = vmul.f32 %v3582_v14, %v970_v62  ;;  %2484 = vmatpush3.bf16.msra.mxu0 %v2663_v11  ;;  %v5006_v15 = vld [vmem:[#allocation37_spill] sm:$0xff]  ;;  %v5010_v11 = vld [vmem:[#allocation31_spill] sm:$0xff] }
 0x160   : > { %v4041_v16 = vadd.f32 %v3584_v37, %v1092_v50  ;;  %2690 = vrsqrt.f32 %v836_v1  ;;  %v827_v25 = vadd.f32 1e-05, %v811_v51  ;;  %v1314_v10 = vpack.c.bf16 %v1236_v13, %v1230_v58  ;;  %v5012_v50 = vld [vmem:[#allocation88_spill] sm:$0xff] }
 0x161   : > { %v5002_v9 = vsub.f32 %v5001_v40, %v3570_v24  ;;  %v812_v57 = vmax.f32 %v796_v43, 0.0  ;;  %v1313_v2 = vpack.c.bf16 %v1235_v32, %v1229_v47  ;;  %v4048_v38 = vadd.f32 %v3584_v37, %v1098_v23  ;;  %v5013_v47 = vld [vmem:[#allocation35_spill] sm:$0xff] }
 0x162   : > { %v5004_v62 = vsub.f32 %v5003_v61, %v3606_v30  ;;  %2692 = vrsqrt.f32 %v827_v25  ;;  %1788 = vmatprep.mubr.bf16.mxu0 %v1314_v10  ;;  %v5007_v27 = vsub.f32 %v5006_v15, %v3669_v60  ;;  %v5011_v49 = vsub.f32 %v5010_v11, %v3669_v60  ;;  %v5015_v10 = vld [vmem:[#allocation56_spill] sm:$0xff] }
 0x163   : > { %v953_v19 = vmul.f32 %v3736_v39, %v5002_v9  ;;  %v5008_v39 = vld [vmem:[#allocation40_spill] sm:$0xff]  ;;  %v828_v35 = vadd.f32 1e-05, %v812_v57  ;;  %1789 = vmatmul.mubr.bf16.gmra.mrb[8].mxu0 %v1313_v2  ;;  %v1310_v30 = vpack.c.bf16 %v4048_v38, %v4041_v16  ;;  %v5014_v43 = vsub.f32 %v5013_v47, %v3684_v5  ;;  %v5016_v2 = vld [vmem:[#allocation62_spill] sm:$0xff] }
 0x164   : > { %v959_v21 = vmul.f32 %v3762_v52, %v5004_v62  ;;  %v966_v24 = vmul.f32 %v3830_v41, %v5007_v27  ;;  %v5009_v54 = vsub.f32 %v5008_v39, %v3684_v5  ;;  %v963_v20 = vmul.f32 %v3830_v41, %v5011_v49  ;;  %v5017_v27 = vld [vmem:[#allocation36_spill] sm:$0xff]  ;;  %v5060_v38 = vld [vmem:[#allocation82_spill] sm:$0xff] }
 0x165   : > { %v1081_v58 = vmul.f32 %v5005_v3, %v953_v19  ;;  %v969_v32 = vmul.f32 %v3851_v59, %v5014_v43  ;;  %2694 = vrsqrt.f32 %v828_v35  ;;  %v880_v40 = vsub.f32 %v5015_v10, %v3772_v45 }
 0x166   : > { %v972_v31 = vmul.f32 %v3851_v59, %v5009_v54  ;;  %v1087_v52 = vmul.f32 %v5005_v3, %v959_v21  ;;  %v1094_v51 = vmul.f32 %v3586_v12, %v966_v24  ;;  %v1091_v25 = vmul.f32 %v3558_v44, %v963_v20 }
 0x167   : > { %v4071_v1 = vadd.f32 %v5012_v50, %v1081_v58  ;;  %v1097_v57 = vmul.f32 %v3558_v44, %v969_v32  ;;  %v886_v61 = vsub.f32 %v5016_v2, %v3797_v42  ;;  %v4094_v62 = vpop.eup %2688  ;;  %v976_v15 = vmul.f32 %v3989_v33, %v880_v40 }
 0x168   : > { %v1100_v13 = vmul.f32 %v3586_v12, %v972_v31  ;;  %v4080_v23 = vadd.f32 %v5012_v50, %v1087_v52  ;;  %v4086_v9 = vadd.f32 %v3588_v48, %v1094_v51  ;;  %v4099_v58 = vadd.f32 %v3560_v36, %v1091_v25  ;;  %v5022_v51 = vld [vmem:[#allocation39_spill] sm:$0xff] }
 0x169   : > { %v5018_v24 = vsub.f32 %v5017_v27, %v3669_v60  ;;  %v5019_v54 = vsub.f32 %v4971_v6, %v3884_v34  ;;  %v5020_v35 = vsub.f32 %v4977_v56, %v3884_v34  ;;  %v4117_v49 = vadd.f32 %v3560_v36, %v1097_v57  ;;  %v5021_v60 = vld [vmem:[#allocation79_spill] sm:$0xff] }
 0x16a   : > { %v4089_v19 = vadd.f32 %v3588_v48, %v1100_v13  ;;  %v1305_v21 = vpack.c.bf16 %v4080_v23, %v4071_v1  ;;  %v895_v20 = vsub.f32 %v5021_v60, %v3945_v4  ;;  %v5023_v6 = vsub.f32 %v5022_v51, %v3684_v5  ;;  %v4127_v47 = vpop.eup %2690 }
 0x16b   : > { %v965_v39 = vmul.f32 %v3830_v41, %v5018_v24  ;;  %v1034_v31 = vmul.f32 %v4094_v62, %v5019_v54  ;;  %v1033_v52 = vmul.f32 %v4094_v62, %v5020_v35  ;;  %v982_v41 = vmul.f32 %v4015_v8, %v886_v61  ;;  %v5026_v61 = vld [vmem:[#allocation61_spill] sm:$0xff] }
 0x16c   : > { %v1312_v11 = vpack.c.bf16 %v4089_v19, %v4086_v9  ;;  %v971_v13 = vmul.f32 %v3851_v59, %v5023_v6  ;;  %v1309_v25 = vpack.c.bf16 %v4117_v49, %v4099_v58  ;;  %v1104_v10 = vmul.f32 %v3582_v14, %v976_v15  ;;  %v4145_v24 = vpop.eup %2692  ;;  %v5069_v49 = vld [vmem:[#allocation33_spill] sm:$0xff] }
 0x16d   : > { %v1093_v56 = vmul.f32 %v5005_v3, %v965_v39  ;;  %v1162_v43 = vmul.f32 %v3572_v7, %v1034_v31  ;;  %v1161_v32 = vmul.f32 %v3576_v22, %v1033_v52  ;;  %v5024_v40 = vsub.f32 %v4978_v28, %v3896_v53 }
 0x16e   : > { %v5025_v59 = vsub.f32 %v4980_v18, %v3896_v53  ;;  %v1110_v2 = vmul.f32 %v3582_v14, %v982_v41  ;;  %v882_v27 = vsub.f32 %v5026_v61, %v3772_v45  ;;  %v1099_v28 = vmul.f32 %v5005_v3, %v971_v13 }
 0x16f   : > { %v1040_v5 = vmul.f32 %v4127_v47, %v5024_v40  ;;  %v1290_v39 = vadd.f32 %v3574_v0, %v1162_v43  ;;  %v1289_v15 = vadd.f32 %v3578_v55, %v1161_v32  ;;  %v4151_v54 = vadd.f32 %v5012_v50, %v1093_v56  ;;  %v4173_v43 = vpop.eup %2694 }
 0x170   : > { %v1039_v57 = vmul.f32 %v4127_v47, %v5025_v59  ;;  %v5027_v35 = vsub.f32 %v3458_v63, %v3920_v46  ;;  %v5028_v60 = vsub.f32 %v3456_v29, %v3920_v46  ;;  %v4164_v51 = vadd.f32 %v3584_v37, %v1104_v10 }
 0x171   : > { %v1168_v18 = vmul.f32 %v3572_v7, %v1040_v5  ;;  %v4167_v6 = vadd.f32 %v3584_v37, %v1110_v2  ;;  %v4170_v13 = vadd.f32 %v5012_v50, %v1099_v28  ;;  %v978_v56 = vmul.f32 %v3989_v33, %v882_v27  ;;  %v5030_v2 = vld [vmem:[#allocation64_spill] sm:$0xff] }
 0x172   : > { %v1167_v31 = vmul.f32 %v3576_v22, %v1039_v57  ;;  %v986_v52 = vmul.f32 %v4145_v24, %v5027_v35  ;;  %v985_v41 = vmul.f32 %v4145_v24, %v5028_v60  ;;  %v5029_v10 = vsub.f32 %v4991_v17, %v3945_v4  ;;  %v5031_v60 = vld [vmem:[#allocation55_spill] sm:$0xff] }
 0x173   : > { %v1296_v63 = vadd.f32 %v3574_v0, %v1168_v18  ;;  %v991_v59 = vmul.f32 %v4173_v43, %v895_v20  ;;  %v1311_v57 = vpack.c.bf16 %v4170_v13, %v4151_v54  ;;  %v888_v61 = vsub.f32 %v5030_v2, %v3797_v42 }
 0x174   : > { %v1295_v32 = vadd.f32 %v3578_v55, %v1167_v31  ;;  %v1114_v29 = vmul.f32 %v3572_v7, %v986_v52  ;;  %v1113_v40 = vmul.f32 %v3576_v22, %v985_v41  ;;  %v992_v5 = vmul.f32 %v4173_v43, %v5029_v10  ;;  %v5032_v10 = vld [vmem:[#allocation59_spill] sm:$0xff] }
 0x175   : > { %v1344_v27 = vpack.c.bf16 %v1296_v63, %v1290_v39  ;;  %v1119_v17 = vmul.f32 %v3576_v22, %v991_v59  ;;  %v984_v52 = vmul.f32 %v4015_v8, %v888_v61  ;;  %v1106_v20 = vmul.f32 %v3586_v12, %v978_v56 }
 0x176   : > { %v1343_v28 = vpack.c.bf16 %v1295_v32, %v1289_v15  ;;  %v1242_v18 = vadd.f32 %v3574_v0, %v1114_v29  ;;  %v1241_v31 = vadd.f32 %v3578_v55, %v1113_v40  ;;  %v1120_v35 = vmul.f32 %v3572_v7, %v992_v5  ;;  %v5033_v15 = vld [vmem:[#allocation78_spill] sm:$0xff]  ;;  %v5034_v32 = vld [vmem:[#allocation84_spill] sm:$0xff]  ;;  %v5035_v5 = vld [vmem:[#allocation41_spill] sm:$0xff] }
 0x177   : > { %1828 = vmatprep.mubr.bf16.mxu1 %v1344_v27  ;;  %v879_v41 = vsub.f32 %v5031_v60, %v3772_v45  ;;  %v885_v39 = vsub.f32 %v5032_v10, %v3797_v42  ;;  %v892_v63 = vsub.f32 %v5033_v15, %v3920_v46  ;;  %v898_v29 = vsub.f32 %v5034_v32, %v3945_v4  ;;  %v5038_v10 = vld [vmem:[#allocation63_spill] sm:$0xff]  ;;  %v5040_v15 = vld [vmem:[#allocation89_spill] sm:$0xff]  ;;  %v5042_v32 = vld [vmem:[#allocation16_spill] sm:$0xff] }
 0x178   : > { %1829 = vmatmul.mubr.bf16.gmra.mrb[12].mxu1 %v1343_v28  ;;  %v1248_v7 = vadd.f32 %v3574_v0, %v1120_v35  ;;  %v1247_v22 = vadd.f32 %v3578_v55, %v1119_v17  ;;  %v1112_v56 = vmul.f32 %v3586_v12, %v984_v52  ;;  %v4206_v40 = vadd.f32 %v3588_v48, %v1106_v20  ;;  %v5037_v17 = vld [vmem:[#allocation60_spill] sm:$0xff] }
 0x179   : > { %v5036_v59 = vpack.c.bf16 %v3902_v26, %v5035_v5  ;;  %v975_v2 = vmul.f32 %v3989_v33, %v879_v41  ;;  %v981_v61 = vmul.f32 %v4015_v8, %v885_v39  ;;  %v988_v27 = vmul.f32 %v4145_v24, %v892_v63 }
 0x17a   : > { %v994_v28 = vmul.f32 %v4173_v43, %v898_v29  ;;  %v1320_v0 = vpack.c.bf16 %v1248_v7, %v1242_v18  ;;  %v1319_v35 = vpack.c.bf16 %v1247_v22, %v1241_v31  ;;  %v4216_v55 = vadd.f32 %v3588_v48, %v1112_v56  ;;  %v5039_v31 = vld [vmem:[#allocation11_spill] sm:$0xff] }
 0x17b   : > { %1869 = vmatprep.mubr.bf16.mxu1 %v5036_v59  ;;  %v881_v52 = vsub.f32 %v5037_v17, %v3772_v45  ;;  %v1103_v20 = vmul.f32 %v3558_v44, %v975_v2  ;;  %v1109_v26 = vmul.f32 %v3558_v44, %v981_v61  ;;  %v1116_v60 = vmul.f32 %v3582_v14, %v988_v27  ;;  %v5043_v45 = vld [vmem:[#allocation9_spill] sm:$0xff]  ;;  %v5047_v61 = vld [vmem:[#allocation51_spill] sm:$0xff] }
 0x17c   : > { %v1122_v41 = vmul.f32 %v3582_v14, %v994_v28  ;;  %1796 = vmatprep.mubr.bf16.mxu0 %v1320_v0  ;;  %v887_v39 = vsub.f32 %v5038_v10, %v3797_v42  ;;  %v5041_v63 = vsub.f32 %v5039_v31, %v5040_v15  ;;  %v5044_v7 = vsub.f32 %v5043_v45, %v5040_v15  ;;  %v5046_v2 = vld [vmem:[#allocation57_spill] sm:$0xff]  ;;  %v5051_v10 = vld [vmem:[#allocation71_spill] sm:$0xff]  ;;  %v5052_v31 = vld [vmem:[#allocation66_spill] sm:$0xff] }
 0x17d   : > { %v977_v18 = vmul.f32 %v3989_v33, %v881_v52  ;;  %1797 = vmatmul.mubr.bf16.gmra.mrb[12].mxu0 %v1319_v35  ;;  %v1316_v56 = vpack.c.bf16 %v4167_v6, %v4164_v51  ;;  %v4238_v5 = vadd.f32 %v3560_v36, %v1103_v20  ;;  %v4241_v42 = vadd.f32 %v3560_v36, %v1109_v26  ;;  %v5045_v33 = vld [vmem:[#allocation83_spill] sm:$0xff]  ;;  %v5049_v52 = vld [vmem:[#allocation77_spill] sm:$0xff] }
 0x17e   : > { %v1002_v29 = vmul.f32 %v5042_v32, %v5041_v63  ;;  %v999_v22 = vmul.f32 %v5042_v32, %v5044_v7  ;;  %v894_v59 = vsub.f32 %v5045_v33, %v3920_v46  ;;  %v5048_v27 = vpack.c.bf16 %v5046_v2, %v5047_v61  ;;  %v5050_v26 = vld [vmem:[#allocation81_spill] sm:$0xff]  ;;  %v5055_v2 = vld [vmem:[#allocation15_spill] sm:$0xff]  ;;  %v5056_v61 = vld [vmem:[#allocation90_spill] sm:$0xff] }
 0x17f   : > { %v4249_v28 = vadd.f32 %v3584_v37, %v1116_v60  ;;  %v4252_v0 = vadd.f32 %v3584_v37, %v1122_v41  ;;  %v983_v51 = vmul.f32 %v4015_v8, %v887_v39  ;;  %v1105_v6 = vmul.f32 %v5005_v3, %v977_v18  ;;  %v5054_v18 = vld [vmem:[#allocation86_spill] sm:$0xff] }
 0x180   : > { %1966 = vmatprep.mubr.bf16.mxu0 %v5048_v27  ;;  %v1318_v35 = vpack.c.bf16 %v4216_v55, %v4206_v40  ;;  %v1315_v17 = vpack.c.bf16 %v4241_v42, %v4238_v5  ;;  %v891_v20 = vsub.f32 %v5049_v52, %v3920_v46  ;;  %v897_v60 = vsub.f32 %v5050_v26, %v3945_v4  ;;  %v5084_v55 = vld [vmem:[#allocation24_spill] sm:$0xff]  ;;  %v5086_v42 = vld [vmem:[#allocation23_spill] sm:$0xff] }
 0x181   : > { %v5053_v41 = vpack.c.bf16 %v5051_v10, %v5052_v31  ;;  %v1111_v8 = vmul.f32 %v5005_v3, %v983_v51  ;;  %v4269_v39 = vadd.f32 %v5012_v50, %v1105_v6  ;;  %v900_v63 = vsub.f32 %v5054_v18, %v3945_v4  ;;  %v5058_v51 = vld [vmem:[#allocation28_spill] sm:$0xff] }
 0x182   : > { %v990_v45 = vmul.f32 %v4145_v24, %v894_v59  ;;  %v987_v7 = vmul.f32 %v4145_v24, %v891_v20  ;;  %v993_v33 = vmul.f32 %v4173_v43, %v897_v60  ;;  %v5057_v27 = vsub.f32 %v5055_v2, %v5056_v61  ;;  %v5059_v6 = vld [vmem:[#allocation32_spill] sm:$0xff]  ;;  %v5061_v2 = vld [vmem:[#allocation85_spill] sm:$0xff] }
 0x183   : > { %1870 = vmatmul.mubr.bf16.vlgmr.msra.gmra.mrb[16].mxu1 %v5053_v41  ;;  %v1128_v26 = vmul.f32 %v3582_v14, %v5059_v6  ;;  %v1322_v10 = vpack.c.bf16 %v4252_v0, %v4249_v28  ;;  %v4288_v59 = vadd.f32 %v5012_v50, %v1111_v8  ;;  %v996_v16 = vmul.f32 %v4173_v43, %v900_v63  ;;  %v5092_v0 = vld [vmem:[#allocation29_spill] sm:$0xff] }
 0x184   : > { %1877 = vmatprep.mubr.bf16.mxu1 %v1310_v30  ;;  %v1006_v52 = vmul.f32 %v5058_v51, %v5057_v27  ;;  %v893_v30 = vsub.f32 %v5060_v38, %v3920_v46  ;;  %v1115_v20 = vmul.f32 %v3558_v44, %v987_v7  ;;  %v1121_v60 = vmul.f32 %v3558_v44, %v993_v33 }
 0x185   : > { %v4297_v41 = vadd.f32 %v3584_v37, %v1128_v26  ;;  %v1317_v18 = vpack.c.bf16 %v4288_v59, %v4269_v39  ;;  %v1118_v8 = vmul.f32 %v3586_v12, %v990_v45  ;;  %v899_v63 = vsub.f32 %v5061_v2, %v3945_v4  ;;  %1967 = vmatmul.mubr.bf16.vlgmr.msra.gmra.mrb[16].mxu0 %v1305_v21  ;;  %v5067_v2 = vld [vmem:[#allocation12_spill] sm:$0xff] }
 0x186   : > { %v1134_v31 = vmul.f32 %v3582_v14, %v1006_v52  ;;  %v989_v27 = vmul.f32 %v4145_v24, %v893_v30  ;;  %v4309_v46 = vadd.f32 %v3560_v36, %v1115_v20  ;;  %v4312_v7 = vadd.f32 %v3560_v36, %v1121_v60  ;;  %v5062_v52 = vld [vmem:[#allocation19_spill] sm:$0xff]  ;;  %1974 = vmatprep.mubr.bf16.mxu0 %v1312_v11  ;;  %v5064_v30 = vld [vmem:[#allocation14_spill] sm:$0xff] }
 0x187   : > { %v5063_v45 = vsub.f32 %v5062_v52, %v5056_v61  ;;  %v1124_v1 = vmul.f32 %v3586_v12, %v996_v16  ;;  %v995_v23 = vmul.f32 %v4173_v43, %v899_v63  ;;  %v1130_v24 = vmul.f32 %v3586_v12, %v1002_v29  ;;  %v5070_v63 = vld [vmem:[#allocation26_spill] sm:$0xff] }
 0x188   : > { %v4315_v33 = vadd.f32 %v3584_v37, %v1134_v31  ;;  %v1117_v21 = vmul.f32 %v5005_v3, %v989_v27  ;;  %v1321_v6 = vpack.c.bf16 %v4312_v7, %v4309_v46  ;;  %v5065_v9 = vsub.f32 %v5064_v30, %v5056_v61  ;;  %v5066_v31 = vld [vmem:[#allocation22_spill] sm:$0xff] }
 0x189   : > { %v1008_v4 = vmul.f32 %v5058_v51, %v5063_v45  ;;  %v1123_v11 = vmul.f32 %v5005_v3, %v995_v23  ;;  %v4345_v29 = vadd.f32 %v3588_v48, %v1130_v24  ;;  %v1127_v16 = vmul.f32 %v3558_v44, %v999_v22  ;;  %v5071_v27 = vld [vmem:[#allocation18_spill] sm:$0xff] }
 0x18a   : > { %v1328_v26 = vpack.c.bf16 %v4315_v33, %v4297_v41  ;;  %v1005_v19 = vmul.f32 %v5058_v51, %v5065_v9  ;;  %v4342_v43 = vadd.f32 %v5012_v50, %v1117_v21  ;;  %v5068_v58 = vsub.f32 %v5066_v31, %v5067_v2  ;;  %v5073_v45 = vld [vmem:[#allocation42_spill] sm:$0xff] }
 0x18b   : > { %v1136_v38 = vmul.f32 %v3586_v12, %v1008_v4  ;;  %1878 = vmatmul.mubr.bf16.gmra.mrb[20].mxu1 %v1309_v25  ;;  %v5072_v52 = vsub.f32 %v5070_v63, %v5071_v27  ;;  %v4361_v23 = vadd.f32 %v5012_v50, %v1123_v11  ;;  %v4364_v22 = vadd.f32 %v3560_v36, %v1127_v16 }
 0x18c   : > { %1885 = vmatprep.mubr.bf16.mxu1 %v1316_v56  ;;  %v1133_v60 = vmul.f32 %v3558_v44, %v1005_v19  ;;  %v1012_v25 = vmul.f32 %v5069_v49, %v5068_v58  ;;  %v5074_v56 = vld [vmem:[#allocation10_spill] sm:$0xff] }
 0x18d   : > { %v4349_v20 = vadd.f32 %v3588_v48, %v1136_v38  ;;  %v1018_v4 = vmul.f32 %v5073_v45, %v5072_v52  ;;  %v5075_v21 = vsub.f32 %v5074_v56, %v5040_v15  ;;  %v5076_v38 = vld [vmem:[#allocation17_spill] sm:$0xff]  ;;  %v1323_v15 = vpack.c.bf16 %v4361_v23, %v4342_v43  ;;  %1975 = vmatmul.mubr.bf16.gmra.mrb[20].mxu0 %v1311_v57  ;;  %v5106_v43 = vld [vmem:[#allocation67_spill] sm:$0xff] }
 0x18e   : > { %v5077_v30 = vsub.f32 %v5076_v38, %v5056_v61  ;;  %v4377_v31 = vadd.f32 %v3560_v36, %v1133_v60  ;;  %v1140_v11 = vmul.f32 %v3582_v14, %v1012_v25  ;;  %v5078_v61 = vld [vmem:[#allocation25_spill] sm:$0xff]  ;;  %1982 = vmatprep.mubr.bf16.mxu0 %v1318_v35  ;;  %v5085_v35 = vsub.f32 %v5084_v55, %v5071_v27  ;;  %v5094_v55 = vld [vmem:[#allocation47_spill] sm:$0xff] }
 0x18f   : > { %v1001_v24 = vmul.f32 %v5042_v32, %v5075_v21  ;;  %v1330_v19 = vpack.c.bf16 %v4349_v20, %v4345_v29  ;;  %v1146_v16 = vmul.f32 %v3582_v14, %v1018_v4  ;;  %v5080_v4 = vld [vmem:[#allocation30_spill] sm:$0xff]  ;;  %v939_v23 = vsub.f32 %v5106_v43, %v3884_v34 }
 0x190   : > { %v1007_v9 = vmul.f32 %v5058_v51, %v5077_v30  ;;  %v5079_v51 = vsub.f32 %v5078_v61, %v5067_v2  ;;  %v1327_v60 = vpack.c.bf16 %v4377_v31, %v4364_v22  ;;  %v4395_v25 = vadd.f32 %v3584_v37, %v1140_v11  ;;  %v5109_v31 = vld [vmem:[#allocation75_spill] sm:$0xff] }
 0x191   : > { %v1129_v32 = vmul.f32 %v5005_v3, %v1001_v24  ;;  %v4398_v52 = vadd.f32 %v3584_v37, %v1146_v16  ;;  %v5081_v56 = vsub.f32 %v5080_v4, %v5071_v27  ;;  %v5082_v24 = vld [vmem:[#allocation21_spill] sm:$0xff]  ;;  %v1017_v16 = vmul.f32 %v5073_v45, %v5085_v35  ;;  %v5088_v4 = vld [vmem:[#allocation27_spill] sm:$0xff] }
 0x192   : > { %v1135_v58 = vmul.f32 %v5005_v3, %v1007_v9  ;;  %v1014_v63 = vmul.f32 %v5069_v49, %v5079_v51  ;;  %v5083_v38 = vsub.f32 %v5082_v24, %v5067_v2  ;;  %v1246_v9 = vadd.f32 %v3588_v48, %v1118_v8  ;;  %v5091_v24 = vld [vmem:[#allocation50_spill] sm:$0xff] }
 0x193   : > { %v1020_v21 = vmul.f32 %v5073_v45, %v5081_v56  ;;  %v4408_v54 = vadd.f32 %v5012_v50, %v1129_v32  ;;  %v1334_v11 = vpack.c.bf16 %v4398_v52, %v4395_v25  ;;  %1886 = vmatmul.mubr.bf16.gmra.mrb[24].mxu1 %v1315_v17  ;;  %v1252_v32 = vadd.f32 %v3588_v48, %v1124_v1  ;;  %v5089_v56 = vld [vmem:[#allocation44_spill] sm:$0xff] }
 0x194   : > { %v4411_v13 = vadd.f32 %v5012_v50, %v1135_v58  ;;  %v1142_v57 = vmul.f32 %v3586_v12, %v1014_v63  ;;  %v1011_v30 = vmul.f32 %v5069_v49, %v5083_v38  ;;  %1893 = vmatprep.mubr.bf16.mxu1 %v1322_v10  ;;  %v1145_v5 = vmul.f32 %v3558_v44, %v1017_v16  ;;  %v5095_v16 = vld [vmem:[#allocation65_spill] sm:$0xff] }
 0x195   : > { %v1148_v40 = vmul.f32 %v3586_v12, %v1020_v21  ;;  %v5087_v17 = vsub.f32 %v5086_v42, %v5067_v2  ;;  %v928_v21 = vsub.f32 %v5089_v56, %v5088_v4  ;;  %v5093_v10 = vsub.f32 %v5092_v0, %v5071_v27  ;;  %1983 = vmatmul.mubr.bf16.gmra.mrb[24].mxu0 %v1317_v18  ;;  %v5098_v56 = vld [vmem:[#allocation48_spill] sm:$0xff] }
 0x196   : > { %v1329_v58 = vpack.c.bf16 %v4411_v13, %v4408_v54  ;;  %v4433_v8 = vadd.f32 %v3588_v48, %v1142_v57  ;;  %v1139_v61 = vmul.f32 %v3558_v44, %v1011_v30  ;;  %v5090_v57 = vld [vmem:[#allocation34_spill] sm:$0xff]  ;;  %v4461_v2 = vadd.f32 %v3560_v36, %v1145_v5  ;;  %v5096_v5 = vld [vmem:[#allocation43_spill] sm:$0xff]  ;;  %v5099_v18 = vld [vmem:[#allocation68_spill] sm:$0xff] }
 0x197   : > { %v4440_v51 = vadd.f32 %v3588_v48, %v1148_v40  ;;  %v1013_v1 = vmul.f32 %v5069_v49, %v5087_v17  ;;  %v934_v28 = vsub.f32 %v5091_v24, %v5090_v57  ;;  %v1019_v38 = vmul.f32 %v5073_v45, %v5093_v10  ;;  %v5100_v24 = vld [vmem:[#allocation74_spill] sm:$0xff] }
 0x198   : > { %v4448_v63 = vadd.f32 %v3560_v36, %v1139_v61  ;;  %v1324_v40 = vpack.c.bf16 %v1252_v32, %v1246_v9  ;;  %v1024_v35 = vmul.f32 %v5094_v55, %v928_v21  ;;  %v927_v17 = vsub.f32 %v5096_v5, %v5088_v4  ;;  %v5097_v32 = vld [vmem:[#allocation49_spill] sm:$0xff] }
 0x199   : > { %v1336_v30 = vpack.c.bf16 %v4440_v51, %v4433_v8  ;;  %v1141_v49 = vmul.f32 %v5005_v3, %v1013_v1  ;;  %v1030_v61 = vmul.f32 %v5095_v16, %v934_v28  ;;  %v1147_v42 = vmul.f32 %v5005_v3, %v1019_v38 }
 0x19a   : > { %v1333_v27 = vpack.c.bf16 %v4461_v2, %v4448_v63  ;;  %1990 = vmatprep.mubr.bf16.mxu0 %v1324_v40  ;;  %v930_v1 = vsub.f32 %v5097_v32, %v5088_v4  ;;  %v933_v39 = vsub.f32 %v5098_v56, %v5090_v57  ;;  %v1023_v59 = vmul.f32 %v5094_v55, %v927_v17  ;;  %v5103_v17 = vld [vmem:[#allocation53_spill] sm:$0xff] }
 0x19b   : > { %v4473_v45 = vadd.f32 %v5012_v50, %v1141_v49  ;;  %v4478_v9 = vadd.f32 %v5012_v50, %v1147_v42  ;;  %v940_v21 = vsub.f32 %v5099_v18, %v3884_v34  ;;  %v946_v28 = vsub.f32 %v5100_v24, %v3896_v53  ;;  %1894 = vmatmul.mubr.bf16.gmra.mrb[28].mxu1 %v1321_v6  ;;  %v5101_v49 = vld [vmem:[#allocation54_spill] sm:$0xff]  ;;  %v5104_v56 = vld [vmem:[#allocation73_spill] sm:$0xff] }
 0x19c   : > { %v1152_v0 = vmul.f32 %v3582_v14, %v1024_v35  ;;  %v1158_v10 = vmul.f32 %v3582_v14, %v1030_v61  ;;  %v936_v40 = vsub.f32 %v5101_v49, %v5090_v57  ;;  %1901 = vmatprep.mubr.bf16.mxu1 %v1328_v26  ;;  %v1029_v42 = vmul.f32 %v5095_v16, %v933_v39  ;;  %v5102_v35 = vld [vmem:[#allocation46_spill] sm:$0xff] }
 0x19d   : > { %v1335_v38 = vpack.c.bf16 %v4478_v9, %v4473_v45  ;;  %v1151_v5 = vmul.f32 %v3558_v44, %v1023_v59  ;;  %v1036_v46 = vmul.f32 %v4094_v62, %v940_v21  ;;  %v1042_v7 = vmul.f32 %v4127_v47, %v946_v28  ;;  %v5105_v21 = vld [vmem:[#allocation76_spill] sm:$0xff]  ;;  %1991 = vmatmul.mubr.bf16.gmra.mrb[28].mxu0 %v1323_v15 }
 0x19e   : > { %v1026_v6 = vmul.f32 %v5094_v55, %v930_v1  ;;  %v929_v61 = vsub.f32 %v5102_v35, %v5088_v4  ;;  %v935_v32 = vsub.f32 %v5103_v17, %v5090_v57  ;;  %v942_v41 = vsub.f32 %v5104_v56, %v3884_v34  ;;  %1998 = vmatprep.mubr.bf16.mxu0 %v1330_v19 }
 0x19f   : > { %v1157_v33 = vmul.f32 %v3558_v44, %v1029_v42  ;;  %v1279_v26 = vadd.f32 %v3560_v36, %v1151_v5  ;;  %v1164_v39 = vmul.f32 %v3582_v14, %v1036_v46  ;;  %v1170_v59 = vmul.f32 %v3582_v14, %v1042_v7  ;;  %v5107_v46 = vld [vmem:[#allocation72_spill] sm:$0xff] }
 0x1a0   : > { %v1032_v18 = vmul.f32 %v5095_v16, %v936_v40  ;;  %v1025_v1 = vmul.f32 %v5094_v55, %v929_v61  ;;  %v1031_v4 = vmul.f32 %v5095_v16, %v935_v32  ;;  %v948_v57 = vsub.f32 %v5105_v21, %v3896_v53  ;;  %v5108_v32 = vld [vmem:[#allocation70_spill] sm:$0xff] }
 0x1a1   : > { %v1285_v24 = vadd.f32 %v3560_v36, %v1157_v33  ;;  %v1292_v28 = vadd.f32 %v3584_v37, %v1164_v39  ;;  %v1298_v49 = vadd.f32 %v3584_v37, %v1170_v59  ;;  %v1038_v14 = vmul.f32 %v4094_v62, %v942_v41 }
 0x1a2   : > { %v1153_v55 = vmul.f32 %v5005_v3, %v1025_v1  ;;  %v1159_v16 = vmul.f32 %v5005_v3, %v1031_v4  ;;  %v1044_v40 = vmul.f32 %v4127_v47, %v948_v57  ;;  %v945_v7 = vsub.f32 %v5107_v46, %v3896_v53 }
 0x1a3   : > { %v1339_v15 = vpack.c.bf16 %v1285_v24, %v1279_v26  ;;  %v1346_v42 = vpack.c.bf16 %v1298_v49, %v1292_v28  ;;  %v1166_v5 = vmul.f32 %v3586_v12, %v1038_v14  ;;  %1902 = vmatmul.mubr.bf16.gmra.mrb[32].mxu1 %v1327_v60  ;;  %v1035_v35 = vmul.f32 %v4094_v62, %v939_v23 }
 0x1a4   : > { %v1281_v29 = vadd.f32 %v5012_v50, %v1153_v55  ;;  %v1287_v20 = vadd.f32 %v5012_v50, %v1159_v16  ;;  %v1172_v19 = vmul.f32 %v3586_v12, %v1044_v40  ;;  %1909 = vmatprep.mubr.bf16.mxu1 %v1334_v11  ;;  %v1041_v17 = vmul.f32 %v4127_v47, %v945_v7 }
 0x1a5   : > { %v1294_v61 = vadd.f32 %v3588_v48, %v1166_v5  ;;  %v941_v22 = vsub.f32 %v5108_v32, %v3884_v34  ;;  %v947_v60 = vsub.f32 %v5109_v31, %v3896_v53  ;;  %v1280_v56 = vadd.f32 %v3584_v37, %v1152_v0  ;;  %1999 = vmatmul.mubr.bf16.gmra.mrb[32].mxu0 %v1329_v58 }
 0x1a6   : > { %v1341_v41 = vpack.c.bf16 %v1287_v20, %v1281_v29  ;;  %v1300_v33 = vadd.f32 %v3588_v48, %v1172_v19  ;;  %v1163_v26 = vmul.f32 %v3558_v44, %v1035_v35  ;;  %v1286_v25 = vadd.f32 %v3584_v37, %v1158_v10  ;;  %2006 = vmatprep.mubr.bf16.mxu0 %v1336_v30 }
 0x1a7   : > { %v1169_v52 = vmul.f32 %v3558_v44, %v1041_v17  ;;  %v1037_v11 = vmul.f32 %v4094_v62, %v941_v22  ;;  %v1043_v39 = vmul.f32 %v4127_v47, %v947_v60  ;;  %v1154_v34 = vmul.f32 %v3586_v12, %v1026_v6 }
 0x1a8   : > { %v1160_v59 = vmul.f32 %v3586_v12, %v1032_v18  ;;  %v1348_v53 = vpack.c.bf16 %v1300_v33, %v1294_v61  ;;  %v1291_v0 = vadd.f32 %v3560_v36, %v1163_v26  ;;  %v1340_v62 = vpack.c.bf16 %v1286_v25, %v1280_v56 }
 0x1a9   : > { %v1297_v1 = vadd.f32 %v3560_v36, %v1169_v52  ;;  %v1165_v37 = vmul.f32 %v5005_v3, %v1037_v11  ;;  %v1171_v44 = vmul.f32 %v5005_v3, %v1043_v39  ;;  %v1282_v36 = vadd.f32 %v3588_v48, %v1154_v34  ;;  %v4609_v39 = vld [vmem:[%s4670_s4] ss:$0 sm:$0xff] }
 0x1aa   : > { %v1288_v54 = vadd.f32 %v3588_v48, %v1160_v59 }
 0x1ab   : > { %v1345_v47 = vpack.c.bf16 %v1297_v1, %v1291_v0  ;;  %v1293_v12 = vadd.f32 %v5012_v50, %v1165_v37  ;;  %v1299_v10 = vadd.f32 %v5012_v50, %v1171_v44  ;;  %1910 = vmatmul.mubr.bf16.gmra.mrb[36].mxu1 %v1333_v27 }
 0x1ac   : > { %1917 = vmatprep.mubr.bf16.mxu1 %v1340_v62  ;;  %v1342_v13 = vpack.c.bf16 %v1288_v54, %v1282_v36 }
 0x1ad   : > { %v1347_v3 = vpack.c.bf16 %v1299_v10, %v1293_v12  ;;  %2007 = vmatmul.mubr.bf16.gmra.mrb[36].mxu0 %v1335_v38 }
 0x1ae   : > { %2014 = vmatprep.mubr.bf16.mxu0 %v1342_v13 }
 0x1b3   : > { %1918 = vmatmul.mubr.bf16.gmra.mrb[40].mxu1 %v1339_v15 }
 0x1b4   : > { %1925 = vmatprep.mubr.bf16.mxu1 %v1346_v42 }
 0x1b5   : > { %2015 = vmatmul.mubr.bf16.gmra.mrb[40].mxu0 %v1341_v41 }
 0x1b6   : > { %2022 = vmatprep.mubr.bf16.mxu0 %v1348_v53 }
 0x1bb   : > { %1926 = vmatmul.mubr.bf16.gmra.mrb[44].mxu1 %v1345_v47 }
 0x1bd   : > { %2023 = vmatmul.mubr.bf16.gmra.mrb[44].mxu0 %v1347_v3 }
 0x20d   : > { %v2381_v50 = vpop.f32.mrb[0].mxu1 }
 0x20e   : > { %v2382_v58 = vpop.f32.mrb[1].mxu1 }
 0x20f   : > { %v4584_v8 = vadd.f32 %v2382_v58, %v2381_v50  ;;  %v2384_v51 = vpop.f32.mrb[2].mxu1 }
 0x210   : > { %v2385_v48 = vpop.f32.mrb[3].mxu1 }
 0x211   : > { %v4586_v63 = vadd.f32 %v2385_v48, %v2384_v51 }
 0x215   : > { %v2357_v30 = vpop.f32.mrb[0].mxu0 }
 0x216   : > { %v2358_v2 = vpop.f32.mrb[1].mxu0 }
 0x217   : > { %v2359_v27 = vadd.f32 %v2358_v2, %v2357_v30  ;;  %v2360_v45 = vpop.f32.mrb[2].mxu0 }
 0x218   : > { %v2361_v9 = vpop.f32.mrb[3].mxu0 }
 0x219   : > { %v2362_v38 = vadd.f32 %v2361_v9, %v2360_v45  ;;  %v2387_v6 = vpop.f32.mrb[4].mxu1  ;;  %v1775_v53 = vadd.f32 %v2359_v27, %v4609_v39 }
 0x21a   : > { %v2388_v18 = vpop.f32.mrb[5].mxu1 }
 0x21b   : > { %v4588_v4 = vadd.f32 %v2388_v18, %v2387_v6  ;;  %v2390_v21 = vpop.f32.mrb[6].mxu1  ;;  %v1778_v44 = vadd.f32 %v2362_v38, %v4609_v39 }
 0x21c   : > { %v2391_v57 = vpop.f32.mrb[7].mxu1 }
 0x21d   : > { %v4590_v24 = vadd.f32 %v2391_v57, %v2390_v21 }
 0x220   : > { %v2363_v28 = vpop.f32.mrb[4].mxu0 }
 0x221   : > { %v2364_v49 = vpop.f32.mrb[5].mxu0 }
 0x222   : > { %v2365_v14 = vadd.f32 %v2364_v49, %v2363_v28  ;;  %v2366_v55 = vpop.f32.mrb[6].mxu0 }
 0x223   : > { %v2367_v16 = vpop.f32.mrb[7].mxu0 }
 0x224   : > { %v2368_v40 = vadd.f32 %v2367_v16, %v2366_v55  ;;  %v1783_v30 = vadd.f32 %v2365_v14, %v4609_v39 }
 0x226   : > { %v1786_v38 = vadd.f32 %v2368_v40, %v4609_v39 }
 0x231   : > { %v2393_v43 = vpop.f32.mrb[8].mxu1 }
 0x232   : > { %v2394_v23 = vpop.f32.mrb[9].mxu1 }
 0x233   : > { %v4592_v15 = vadd.f32 %v2394_v23, %v2393_v43  ;;  %v2396_v42 = vpop.f32.mrb[10].mxu1 }
 0x234   : > { %v2397_v5 = vpop.f32.mrb[11].mxu1 }
 0x235   : > { %v4594_v46 = vadd.f32 %v2397_v5, %v2396_v42 }
 0x236   : > { %v2369_v7 = vpop.f32.mrb[8].mxu0 }
 0x237   : > { %v2370_v29 = vpop.f32.mrb[9].mxu0 }
 0x238   : > { %v2371_v20 = vadd.f32 %v2370_v29, %v2369_v7  ;;  %v2372_v19 = vpop.f32.mrb[10].mxu0 }
 0x239   : > { %v2373_v35 = vpop.f32.mrb[11].mxu0 }
 0x23a   : > { %v4596_v61 = vadd.f32 %v2373_v35, %v2372_v19  ;;  %v1791_v5 = vadd.f32 %v2371_v20, %v4609_v39 }
 0x24b   : > { %v2399_v17 = vpop.f32.mrb[12].mxu1 }
 0x24c   : > { %v2400_v32 = vpop.f32.mrb[13].mxu1 }
 0x24d   : > { %v4598_v22 = vadd.f32 %v2400_v32, %v2399_v17  ;;  %v2402_v31 = vpop.f32.mrb[14].mxu1  ;;  %v1794_v17 = vadd.f32 %v4596_v61, %v4609_v39 }
 0x24e   : > { %v2403_v60 = vpop.f32.mrb[15].mxu1 }
 0x24f   : > { %v4600_v56 = vadd.f32 %v2403_v60, %v2402_v31 }
 0x250   : > { %v2375_v41 = vpop.f32.mrb[12].mxu0 }
 0x251   : > { %v2376_v33 = vpop.f32.mrb[13].mxu0 }
 0x252   : > { %v4604_v26 = vadd.f32 %v2376_v33, %v2375_v41  ;;  %v2378_v25 = vpop.f32.mrb[14].mxu0 }
 0x253   : > { %v2379_v52 = vpop.f32.mrb[15].mxu0 }
 0x254   : > { %v4611_v34 = vadd.f32 %v2379_v52, %v2378_v25 }
 0x256   : > { %v2421_v11 = vpop.f32.mrb[16].mxu1 }
 0x257   : > { %v2422_v59 = vpop.f32.mrb[17].mxu1 }
 0x258   : > { %v2423_v0 = vadd.f32 %v2422_v59, %v2421_v11  ;;  %v2424_v1 = vpop.f32.mrb[18].mxu1  ;;  %v2485_v12 = vpop.f32.mrb[16].mxu0 }
 0x259   : > { %v2425_v37 = vpop.f32.mrb[19].mxu1  ;;  %v2486_v36 = vpop.f32.mrb[17].mxu0 }
 0x25a   : > { %v1872_v62 = vadd.f32 %v2423_v0, %v1775_v53  ;;  %v2426_v47 = vadd.f32 %v2425_v37, %v2424_v1  ;;  %v2487_v54 = vadd.f32 %v2486_v36, %v2485_v12  ;;  %v2488_v3 = vpop.f32.mrb[18].mxu0  ;;  %v1799_v37 = vadd.f32 %v4604_v26, %v4609_v39 }
 0x25b   : > { %v2489_v13 = vpop.f32.mrb[19].mxu0  ;;  %v1802_v12 = vadd.f32 %v4611_v34, %v4609_v39 }
 0x25c   : > { %v1875_v10 = vadd.f32 %v2426_v47, %v1778_v44  ;;  %v1969_v58 = vadd.f32 %v2487_v54, %v1872_v62  ;;  %v2490_v51 = vadd.f32 %v2489_v13, %v2488_v3 }
 0x25e   : > { %v2427_v50 = vpop.f32.mrb[20].mxu1  ;;  %v1972_v45 = vadd.f32 %v2490_v51, %v1875_v10 }
 0x25f   : > { %v2428_v48 = vpop.f32.mrb[21].mxu1 }
 0x260   : > { %v2429_v2 = vadd.f32 %v2428_v48, %v2427_v50  ;;  %v2430_v27 = vpop.f32.mrb[22].mxu1  ;;  %v2297_v21 = vpack.c.bf16 %v1972_v45, %v1969_v58  ;;  %v2491_v57 = vpop.f32.mrb[20].mxu0  ;;  %v1807_v45 = vadd.f32 %v4584_v8, %v4609_v39 }
 0x261   : > { %v2431_v9 = vpop.f32.mrb[23].mxu1  ;;  %v2492_v49 = vpop.f32.mrb[21].mxu0 }
 0x262   : > { %v1880_v6 = vadd.f32 %v2429_v2, %v1783_v30  ;;  %v2432_v18 = vadd.f32 %v2431_v9, %v2430_v27  ;;  %2298 = vst [vmem:[%s4620_s8] sm:$0xff] %v2297_v21   ;;  %v2493_v14 = vadd.f32 %v2492_v49, %v2491_v57  ;;  %v2494_v55 = vpop.f32.mrb[22].mxu0 }
 0x263   : > { %v2495_v16 = vpop.f32.mrb[23].mxu0 }
 0x264   : > { %v1883_v28 = vadd.f32 %v2432_v18, %v1786_v38  ;;  %v1977_v23 = vadd.f32 %v2493_v14, %v1880_v6  ;;  %v2496_v40 = vadd.f32 %v2495_v16, %v2494_v55  ;;  %v1810_v18 = vadd.f32 %v4586_v63, %v4609_v39 }
 0x266   : > { %v2433_v43 = vpop.f32.mrb[24].mxu1  ;;  %v1980_v19 = vadd.f32 %v2496_v40, %v1883_v28 }
 0x267   : > { %v2434_v42 = vpop.f32.mrb[25].mxu1 }
 0x268   : > { %v2435_v7 = vadd.f32 %v2434_v42, %v2433_v43  ;;  %v2436_v29 = vpop.f32.mrb[26].mxu1  ;;  %v2302_v60 = vpack.c.bf16 %v1980_v19, %v1977_v23  ;;  %v2497_v41 = vpop.f32.mrb[24].mxu0 }
 0x269   : > { %v2437_v35 = vpop.f32.mrb[27].mxu1  ;;  %v2498_v25 = vpop.f32.mrb[25].mxu0 }
 0x26a   : > { %v1888_v32 = vadd.f32 %v2435_v7, %v1791_v5  ;;  %v2438_v31 = vadd.f32 %v2437_v35, %v2436_v29  ;;  %2334 = vst [vmem:[%s4620_s8 + $0x8] sm:$0xff] %v2302_v60   ;;  %v2499_v52 = vadd.f32 %v2498_v25, %v2497_v41  ;;  %v2500_v11 = vpop.f32.mrb[26].mxu0  ;;  %v1815_v7 = vadd.f32 %v4588_v4, %v4609_v39 }
 0x26b   : > { %v2501_v59 = vpop.f32.mrb[27].mxu0 }
 0x26c   : > { %v1891_v33 = vadd.f32 %v2438_v31, %v1794_v17  ;;  %v1985_v20 = vadd.f32 %v2499_v52, %v1888_v32  ;;  %v2502_v0 = vadd.f32 %v2501_v59, %v2500_v11  ;;  %v1818_v17 = vadd.f32 %v4590_v24, %v4609_v39 }
 0x26e   : > { %v2439_v53 = vpop.f32.mrb[28].mxu1  ;;  %v1988_v62 = vadd.f32 %v2502_v0, %v1891_v33 }
 0x26f   : > { %v2440_v1 = vpop.f32.mrb[29].mxu1 }
 0x270   : > { %v2441_v44 = vadd.f32 %v2440_v1, %v2439_v53  ;;  %v2442_v61 = vpop.f32.mrb[30].mxu1  ;;  %v2307_v54 = vpack.c.bf16 %v1988_v62, %v1985_v20  ;;  %v2503_v3 = vpop.f32.mrb[28].mxu0  ;;  %v1823_v1 = vadd.f32 %v4592_v15, %v4609_v39  ;;  %v1826_v62 = vadd.f32 %v4594_v46, %v4609_v39 }
 0x271   : > { %v2443_v47 = vpop.f32.mrb[31].mxu1  ;;  %v2504_v50 = vpop.f32.mrb[29].mxu0 }
 0x272   : > { %v1896_v10 = vadd.f32 %v2441_v44, %v1799_v37  ;;  %v2444_v36 = vadd.f32 %v2443_v47, %v2442_v61  ;;  %2335 = vst [vmem:[%s4620_s8 + $0x10] sm:$0xff] %v2307_v54   ;;  %v2505_v58 = vadd.f32 %v2504_v50, %v2503_v3  ;;  %v2506_v51 = vpop.f32.mrb[30].mxu0 }
 0x273   : > { %v2507_v48 = vpop.f32.mrb[31].mxu0 }
 0x274   : > { %v1899_v13 = vadd.f32 %v2444_v36, %v1802_v12  ;;  %v1993_v26 = vadd.f32 %v2505_v58, %v1896_v10  ;;  %v2508_v2 = vadd.f32 %v2507_v48, %v2506_v51 }
 0x276   : > { %v2445_v30 = vpop.f32.mrb[32].mxu1  ;;  %v1996_v38 = vadd.f32 %v2508_v2, %v1899_v13 }
 0x277   : > { %v2446_v27 = vpop.f32.mrb[33].mxu1 }
 0x278   : > { %v2447_v9 = vadd.f32 %v2446_v27, %v2445_v30  ;;  %v2448_v34 = vpop.f32.mrb[34].mxu1  ;;  %v2312_v28 = vpack.c.bf16 %v1996_v38, %v1993_v26  ;;  %v2509_v49 = vpop.f32.mrb[32].mxu0  ;;  %v1831_v26 = vadd.f32 %v4598_v22, %v4609_v39 }
 0x279   : > { %v2449_v6 = vpop.f32.mrb[35].mxu1  ;;  %v2510_v55 = vpop.f32.mrb[33].mxu0 }
 0x27a   : > { %v1904_v21 = vadd.f32 %v2447_v9, %v1807_v45  ;;  %v2450_v57 = vadd.f32 %v2449_v6, %v2448_v34  ;;  %2336 = vst [vmem:[%s4620_s8 + $0x18] sm:$0xff] %v2312_v28   ;;  %v2511_v16 = vadd.f32 %v2510_v55, %v2509_v49  ;;  %v2512_v43 = vpop.f32.mrb[34].mxu0  ;;  %v1834_v9 = vadd.f32 %v4600_v56, %v4609_v39 }
 0x27b   : > { %v2513_v23 = vpop.f32.mrb[35].mxu0 }
 0x27c   : > { %v1907_v14 = vadd.f32 %v2450_v57, %v1810_v18  ;;  %v2001_v8 = vadd.f32 %v2511_v16, %v1904_v21  ;;  %v2514_v42 = vadd.f32 %v2513_v23, %v2512_v43 }
 0x27e   : > { %v2451_v40 = vpop.f32.mrb[36].mxu1  ;;  %v2004_v19 = vadd.f32 %v2514_v42, %v1907_v14 }
 0x27f   : > { %v2452_v5 = vpop.f32.mrb[37].mxu1 }
 0x280   : > { %v2453_v29 = vadd.f32 %v2452_v5, %v2451_v40  ;;  %v2454_v63 = vpop.f32.mrb[38].mxu1  ;;  %v2317_v60 = vpack.c.bf16 %v2004_v19, %v2001_v8  ;;  %v2515_v41 = vpop.f32.mrb[36].mxu0 }
 0x281   : > { %v2455_v35 = vpop.f32.mrb[39].mxu1  ;;  %v2516_v25 = vpop.f32.mrb[37].mxu0 }
 0x282   : > { %v1912_v32 = vadd.f32 %v2453_v29, %v1815_v7  ;;  %v2456_v31 = vadd.f32 %v2455_v35, %v2454_v63  ;;  %2337 = vst [vmem:[%s4620_s8 + $0x20] sm:$0xff] %v2317_v60   ;;  %v2517_v52 = vadd.f32 %v2516_v25, %v2515_v41  ;;  %v2518_v11 = vpop.f32.mrb[38].mxu0 }
 0x283   : > { %v2519_v59 = vpop.f32.mrb[39].mxu0 }
 0x284   : > { %v1915_v33 = vadd.f32 %v2456_v31, %v1818_v17  ;;  %v2009_v4 = vadd.f32 %v2517_v52, %v1912_v32  ;;  %v2520_v20 = vadd.f32 %v2519_v59, %v2518_v11 }
 0x286   : > { %v2457_v53 = vpop.f32.mrb[40].mxu1  ;;  %v2012_v44 = vadd.f32 %v2520_v20, %v1915_v33 }
 0x287   : > { %v2458_v0 = vpop.f32.mrb[41].mxu1 }
 0x288   : > { %v2459_v37 = vadd.f32 %v2458_v0, %v2457_v53  ;;  %v2460_v24 = vpop.f32.mrb[42].mxu1  ;;  %v2322_v10 = vpack.c.bf16 %v2012_v44, %v2009_v4  ;;  %v2521_v36 = vpop.f32.mrb[40].mxu0 }
 0x289   : > { %v2461_v61 = vpop.f32.mrb[43].mxu1  ;;  %v2522_v3 = vpop.f32.mrb[41].mxu0 }
 0x28a   : > { %v1920_v47 = vadd.f32 %v2459_v37, %v1823_v1  ;;  %v2462_v12 = vadd.f32 %v2461_v61, %v2460_v24  ;;  %2338 = vst [vmem:[%s4620_s8 + $0x28] sm:$0xff] %v2322_v10   ;;  %v2523_v13 = vadd.f32 %v2522_v3, %v2521_v36  ;;  %v2524_v50 = vpop.f32.mrb[42].mxu0 }
 0x28b   : > { %v2525_v58 = vpop.f32.mrb[43].mxu0 }
 0x28c   : > { %v1923_v54 = vadd.f32 %v2462_v12, %v1826_v62  ;;  %v2017_v15 = vadd.f32 %v2523_v13, %v1920_v47  ;;  %v2526_v48 = vadd.f32 %v2525_v58, %v2524_v50 }
 0x28e   : > { %v2463_v51 = vpop.f32.mrb[44].mxu1  ;;  %v2020_v27 = vadd.f32 %v2526_v48, %v1923_v54 }
 0x28f   : > { %v2464_v30 = vpop.f32.mrb[45].mxu1 }
 0x290   : > { %v2465_v2 = vadd.f32 %v2464_v30, %v2463_v51  ;;  %v2466_v46 = vpop.f32.mrb[46].mxu1  ;;  %v2327_v6 = vpack.c.bf16 %v2020_v27, %v2017_v15  ;;  %v2527_v18 = vpop.f32.mrb[44].mxu0 }
 0x291   : > { %v2467_v45 = vpop.f32.mrb[47].mxu1  ;;  %v2528_v57 = vpop.f32.mrb[45].mxu0 }
 0x292   : > { %v1928_v34 = vadd.f32 %v2465_v2, %v1831_v26  ;;  %v2468_v38 = vadd.f32 %v2467_v45, %v2466_v46  ;;  %2339 = vst [vmem:[%s4620_s8 + $0x30] sm:$0xff] %v2327_v6   ;;  %v2529_v28 = vadd.f32 %v2528_v57, %v2527_v18  ;;  %v2530_v49 = vpop.f32.mrb[46].mxu0 }
 0x293   : > { %v2531_v14 = vpop.f32.mrb[47].mxu0 }
 0x294   : > { %v1931_v21 = vadd.f32 %v2468_v38, %v1834_v9  ;;  %v2025_v55 = vadd.f32 %v2529_v28, %v1928_v34  ;;  %v2532_v22 = vadd.f32 %v2531_v14, %v2530_v49 }
 0x296   : > { %v2028_v16 = vadd.f32 %v2532_v22, %v1931_v21 }
 0x298   : > { %v2332_v43 = vpack.c.bf16 %v2028_v16, %v2025_v55 }
 0x29a   : > { %2340 = vst [vmem:[%s4620_s8 + $0x38] sm:$0xff] %v2332_v43  }
 0x29b PF: > { %p16_p3 = scmp.ge.s32.totalorder %s2879_s23, 4   ;;  %s5110_s18 = smov %s2812_s19 }
 0x29c   : > { %s5111_s19 = smov %s2816_s20  ;;  %s5112_s20 = smov %s2889_s26 }
 0x29d   : > { %s5113_s21 = smov %s2879_s23  ;;  %18 = sbr.rel (!%p16_p3) target bundleno = 4 (0x4), region = 88 }
 0x2a4   :  { %2133 = vsyncpa [#allocation3], 1 }
 0x2a5   :  { %2135 = vsyncpa [#allocation3 + $0x1], 1 }
 0x2a6   :  { %2136 = vsyncpa [#allocation5], 1 }

</bundles_post_ra>
